<compile_context>
chip_gen: v5e
topology: v5e:2x2
jax: 0.10.0
libtpu: 0.0.40
codegen_flags: <defaults>
</compile_context>

<pallas_src>
import jax
import jax.numpy as jnp
import numpy as np
from jax.experimental import pallas as pl
from jax.experimental.pallas import tpu as pltpu

# small config (embdim % nheads == 0, head_dim % 4 == 0)
B, T, C, H = 2, 16, 128, 4
D = C // H                                     # head dim = 32
HID = 4 * C                                    # MLP hidden = 512
LN_EPS = 1e-5                                  # nn.LayerNorm default
RMS_EPS = float(jnp.finfo(jnp.float32).eps)    # F.rms_norm default (eps=None)
ATTN_SCALE = 0.12
NEG_INF = -1e30


def block_kernel(x_ref, g1_ref, b1_ref, wqkv_ref, wproj_ref,
                 g2_ref, b2_ref, wfc_ref, wfc2_ref,
                 cos_ref, sin_ref, rot_ref, hmean_ref, o_ref):
    x = x_ref[0]                                        # (T, C) f32

    # ---------- LayerNorm 1 ----------
    mu = jnp.mean(x, axis=-1, keepdims=True)
    var = jnp.mean(jnp.square(x - mu), axis=-1, keepdims=True)
    xn = (x - mu) * jax.lax.rsqrt(var + LN_EPS) * g1_ref[...] + b1_ref[...]

    # ---------- fused QKV projection (bf16 in, f32 accumulate) ----------
    qkv = jnp.dot(xn.astype(jnp.bfloat16), wqkv_ref[...],
                  preferred_element_type=jnp.float32)   # (T, 3C) f32
    q = qkv[:, :C]                                      # 128-lane aligned slices
    k = qkv[:, C:2 * C]
    v = qkv[:, 2 * C:]

    # ---------- full-width per-head RMS norm + rotary (no sub-128-lane slicing) ----
    def rms_rope(t):                                    # t: (T, C)
        # per-head mean of squares broadcast back over the head's lanes via block matmul
        ms = jnp.dot(t * t, hmean_ref[...], preferred_element_type=jnp.float32)
        tn = t * jax.lax.rsqrt(ms + RMS_EPS)
        # rotate-half within each head via a (C,C) permutation matmul on the MXU
        rot = jnp.dot(tn, rot_ref[...], preferred_element_type=jnp.float32)
        return tn * cos_ref[...] + rot * sin_ref[...]

    qr = rms_rope(q)
    kr = rms_rope(k)
    kr16 = kr.astype(jnp.bfloat16)

    # masks
    row = jax.lax.broadcasted_iota(jnp.int32, (T, T), 0)
    col = jax.lax.broadcasted_iota(jnp.int32, (T, T), 1)
    causal = col <= row
    lane = jax.lax.broadcasted_iota(jnp.int32, (1, C), 1)

    # ---------- causal attention: per-head masked full-width matmuls ----------
    y = jnp.zeros((T, C), jnp.float32)
    for h in range(H):                                  # static unroll, H=4
        hm = (lane >= h * D) & (lane < (h + 1) * D)     # (1, C) head-lane mask
        qh = jnp.where(hm, qr, 0.0).astype(jnp.bfloat16)
        # scores over head h only (other lanes zeroed): (T,C) x (T,C)^T -> (T,T)
        s = jax.lax.dot_general(qh, kr16, (((1,), (1,)), ((), ())),
                                preferred_element_type=jnp.float32) * ATTN_SCALE
        s = jnp.where(causal, s, NEG_INF)
        s = s - jnp.max(s, axis=-1, keepdims=True)
        p = jnp.exp(s)
        p = p * pl.reciprocal(jnp.sum(p, axis=-1, keepdims=True), approx=True)
        vh = jnp.where(hm, v, 0.0).astype(jnp.bfloat16)
        # (T,T) x (T,C); non-head lanes of vh are zero, so summing over h == concat
        y = y + jnp.dot(p.astype(jnp.bfloat16), vh,
                        preferred_element_type=jnp.float32)

    y = jnp.dot(y.astype(jnp.bfloat16), wproj_ref[...],
                preferred_element_type=jnp.float32)
    x1 = x + y                                          # first residual

    # ---------- LayerNorm 2 + squared-ReLU MLP ----------
    mu2 = jnp.mean(x1, axis=-1, keepdims=True)
    var2 = jnp.mean(jnp.square(x1 - mu2), axis=-1, keepdims=True)
    xn2 = (x1 - mu2) * jax.lax.rsqrt(var2 + LN_EPS) * g2_ref[...] + b2_ref[...]
    hft = jnp.dot(xn2.astype(jnp.bfloat16), wfc_ref[...],
                  preferred_element_type=jnp.float32)   # (T, HID)
    hft = jnp.square(jnp.maximum(hft, 0.0))
    m = jnp.dot(hft.astype(jnp.bfloat16), wfc2_ref[...],
                preferred_element_type=jnp.float32)     # (T, C)

    o_ref[0] = (x1 + m).astype(o_ref.dtype)


def _const(shape):
    n = len(shape)
    return pl.BlockSpec(shape, lambda b: (0,) * n)


@jax.jit
def block_forward(x, kernel_params):
    (g1, b1, wqkv, wproj, g2, b2, wfc, wfc2, cosf, sinf, rotm, hmean) = kernel_params
    return pl.pallas_call(
        block_kernel,
        out_shape=jax.ShapeDtypeStruct((B, T, C), jnp.float32),
        grid_spec=pltpu.PrefetchScalarGridSpec(
            num_scalar_prefetch=0,
            grid=(B,),
            in_specs=[
                pl.BlockSpec((1, T, C), lambda b: (b, 0, 0)),   # x (one batch row / step)
                _const((1, C)), _const((1, C)),                 # ln1 gamma, beta
                _const((C, 3 * C)),                             # W_qkv^T  (bf16)
                _const((C, C)),                                 # W_proj^T (bf16)
                _const((1, C)), _const((1, C)),                 # ln2 gamma, beta
                _const((C, HID)),                               # W_fc^T   (bf16)
                _const((HID, C)),                               # W_fc2^T  (bf16)
                _const((T, C)), _const((T, C)),                 # full-width cos / sin
                _const((C, C)),                                 # rotate-half permutation
                _const((C, C)),                                 # per-head mean matrix
            ],
            out_specs=pl.BlockSpec((1, T, C), lambda b: (b, 0, 0)),
        ),
        compiler_params=pltpu.CompilerParams(
            dimension_semantics=("parallel",)),                 # batch rows across TCs (v7x)
    )(x, g1, b1, wqkv, wproj, g2, b2, wfc, wfc2, cosf, sinf, rotm, hmean)


# ---------------- deterministic parameter construction ----------------
def casted_linear_weight(key, in_f, out_f):
    # CastedLinear.reset_parameters: uniform(-bound, bound), bound = sqrt(3)*0.5/sqrt(in)
    std = 0.5 * in_f ** (-0.5)
    bound = (3.0 ** 0.5) * std
    w = jax.random.uniform(key, (out_f, in_f), jnp.float32, -bound, bound)  # torch (out,in)
    return w.T                                                               # pass (in,out)


def rotary_tables(dim, seqlen):
    af = (1.0 / 1024.0) ** jnp.linspace(0.0, 1.0, dim // 4, dtype=jnp.float32)
    af = jnp.concatenate([af, jnp.zeros((dim // 4,), jnp.float32)])
    t = jnp.arange(seqlen, dtype=jnp.float32)
    theta = jnp.outer(t, af)                             # (seqlen, dim//2)
    return jnp.cos(theta), jnp.sin(theta)


def rope_kernel_tables(cos, sin):
    # full-width (T, C) tables, sign pattern baked in, replicated across heads
    cos_full = jnp.tile(jnp.concatenate([cos, cos], axis=-1), (1, H))
    sin_full = jnp.tile(jnp.concatenate([sin, -sin], axis=-1), (1, H))
    # rotate-half-within-head permutation matrix (C, C)
    rot = np.zeros((C, C), np.float32)
    for h in range(H):
        for j in range(D // 2):
            rot[h * D + D // 2 + j, h * D + j] = 1.0     # out first half  <- in second half
            rot[h * D + j, h * D + D // 2 + j] = 1.0     # out second half <- in first half
    # per-head mean-of-squares broadcast matrix (C, C): block diag of 1/D
    hmean = np.kron(np.eye(H, dtype=np.float32), np.full((D, D), 1.0 / D, np.float32))
    return cos_full, sin_full, jnp.asarray(rot), jnp.asarray(hmean)


# ---------------- pure-JAX f32 reference (faithful to the PyTorch module) ----------------
def reference(x, params, cos, sin):
    g1, b1, wqkv, wproj, g2, b2, wfc, wfc2 = params

    def ln(t, g, bt):
        mu = t.mean(-1, keepdims=True)
        var = ((t - mu) ** 2).mean(-1, keepdims=True)
        return (t - mu) / jnp.sqrt(var + LN_EPS) * g + bt

    def rms(t):
        return t / jnp.sqrt((t * t).mean(-1, keepdims=True) + RMS_EPS)

    def rope(t):                                         # (B,T,H,D)
        c = cos[None, :, None, :]
        s = sin[None, :, None, :]
        t1, t2 = t[..., : D // 2], t[..., D // 2:]
        return jnp.concatenate([t1 * c + t2 * s, -t1 * s + t2 * c], axis=-1)

    xn = ln(x, g1[0], b1[0])
    qkv = xn @ wqkv
    q, k, v = jnp.split(qkv, 3, axis=-1)
    q = rope(rms(q.reshape(B, T, H, D))).transpose(0, 2, 1, 3)
    k = rope(rms(k.reshape(B, T, H, D))).transpose(0, 2, 1, 3)
    v = v.reshape(B, T, H, D).transpose(0, 2, 1, 3)
    s = jnp.einsum('bhtd,bhsd->bhts', q, k) * ATTN_SCALE
    mask = jnp.tril(jnp.ones((T, T), bool))
    s = jnp.where(mask, s, -jnp.inf)
    p = jax.nn.softmax(s, axis=-1)
    y = jnp.einsum('bhts,bhsd->bhtd', p, v).transpose(0, 2, 1, 3).reshape(B, T, C)
    x1 = x + y @ wproj
    xn2 = ln(x1, g2[0], b2[0])
    hft = jnp.maximum(xn2 @ wfc, 0.0) ** 2
    return x1 + hft @ wfc2


if __name__ == "__main__":
    key = jax.random.PRNGKey(0)
    k_x, k1, k2, k3, k4 = jax.random.split(key, 5)

    x = jax.random.normal(k_x, (B, T, C), jnp.float32)
    g1 = jnp.ones((1, C), jnp.float32)
    b1 = jnp.zeros((1, C), jnp.float32)
    g2 = jnp.ones((1, C), jnp.float32)
    b2 = jnp.zeros((1, C), jnp.float32)
    wqkv = casted_linear_weight(k1, C, 3 * C)
    wproj = casted_linear_weight(k2, C, C)
    wfc = casted_linear_weight(k3, C, HID)
    wfc2 = casted_linear_weight(k4, HID, C)
    cos, sin = rotary_tables(D, T)
    cos_full, sin_full, rot_m, hmean_m = rope_kernel_tables(cos, sin)

    ref_params = (g1, b1, wqkv, wproj, g2, b2, wfc, wfc2)
    bf16 = jnp.bfloat16
    kernel_params = (g1, b1,
                     wqkv.astype(bf16), wproj.astype(bf16),
                     g2, b2,
                     wfc.astype(bf16), wfc2.astype(bf16),
                     cos_full, sin_full, rot_m, hmean_m)

    out = jax.block_until_ready(block_forward(x, kernel_params))
    ref = reference(x, ref_params, cos, sin)

    assert out.shape == (B, T, C)
    # bf16 matmul inputs (f32 accumulation) -> looser tolerance vs. the f32 reference
    assert jnp.allclose(out, ref, atol=3e-2, rtol=3e-2), \
        f"max abs err = {float(jnp.max(jnp.abs(out - ref)))}"
    print("KERNEL_OK")
</pallas_src>

<mosaic_0001>
module attributes {stable_mosaic.version = 11 : i64} {
  func.func @block_kernel(%arg0: i32, %arg1: memref<1x16x128xf32, #tpu.memory_space<vmem>>, %arg2: memref<1x128xf32, #tpu.memory_space<vmem>>, %arg3: memref<1x128xf32, #tpu.memory_space<vmem>>, %arg4: memref<128x384xbf16, #tpu.memory_space<vmem>>, %arg5: memref<128x128xbf16, #tpu.memory_space<vmem>>, %arg6: memref<1x128xf32, #tpu.memory_space<vmem>>, %arg7: memref<1x128xf32, #tpu.memory_space<vmem>>, %arg8: memref<128x512xbf16, #tpu.memory_space<vmem>>, %arg9: memref<512x128xbf16, #tpu.memory_space<vmem>>, %arg10: memref<16x128xf32, #tpu.memory_space<vmem>>, %arg11: memref<16x128xf32, #tpu.memory_space<vmem>>, %arg12: memref<128x128xf32, #tpu.memory_space<vmem>>, %arg13: memref<128x128xf32, #tpu.memory_space<vmem>>, %arg14: memref<1x16x128xf32, #tpu.memory_space<vmem>>) attributes {dimension_semantics = [#tpu.dimension_semantics<parallel>], iteration_bounds = array<i64: 2>, scalar_prefetch = 0 : i64, scratch_operands = 0 : i64, tpu.core_type = #tpu.core_type<tc>, window_params = [{transform_indices = @transform_0, window_bounds = array<i64: 1, 16, 128>}, {pipeline_mode = #tpu.pipeline_mode<synchronous>, transform_indices = @transform_1, window_bounds = array<i64: 1, 128>}, {pipeline_mode = #tpu.pipeline_mode<synchronous>, transform_indices = @transform_2, window_bounds = array<i64: 1, 128>}, {pipeline_mode = #tpu.pipeline_mode<synchronous>, transform_indices = @transform_3, window_bounds = array<i64: 128, 384>}, {pipeline_mode = #tpu.pipeline_mode<synchronous>, transform_indices = @transform_4, window_bounds = array<i64: 128, 128>}, {pipeline_mode = #tpu.pipeline_mode<synchronous>, transform_indices = @transform_5, window_bounds = array<i64: 1, 128>}, {pipeline_mode = #tpu.pipeline_mode<synchronous>, transform_indices = @transform_6, window_bounds = array<i64: 1, 128>}, {pipeline_mode = #tpu.pipeline_mode<synchronous>, transform_indices = @transform_7, window_bounds = array<i64: 128, 512>}, {pipeline_mode = #tpu.pipeline_mode<synchronous>, transform_indices = @transform_8, window_bounds = array<i64: 512, 128>}, {pipeline_mode = #tpu.pipeline_mode<synchronous>, transform_indices = @transform_9, window_bounds = array<i64: 16, 128>}, {pipeline_mode = #tpu.pipeline_mode<synchronous>, transform_indices = @transform_10, window_bounds = array<i64: 16, 128>}, {pipeline_mode = #tpu.pipeline_mode<synchronous>, transform_indices = @transform_11, window_bounds = array<i64: 128, 128>}, {pipeline_mode = #tpu.pipeline_mode<synchronous>, transform_indices = @transform_12, window_bounds = array<i64: 128, 128>}, {transform_indices = @transform_13, window_bounds = array<i64: 1, 16, 128>}]} {
    %c0 = arith.constant 0 : index
    %c0_0 = arith.constant 0 : index
    %c0_1 = arith.constant 0 : index
    %0 = vector.load %arg1[%c0, %c0_0, %c0_1] : memref<1x16x128xf32, #tpu.memory_space<vmem>>, vector<1x16x128xf32>
    %1 = vector.shape_cast %0 : vector<1x16x128xf32> to vector<16x128xf32>
    %cst = arith.constant dense<0.000000e+00> : vector<16xf32>
    %2 = vector.multi_reduction <add>, %1, %cst [1] : vector<16x128xf32> to vector<16xf32>
    %3 = vector.shape_cast %2 : vector<16xf32> to vector<16x1xf32>
    %cst_2 = arith.constant 1.280000e+02 : f32
    %4 = vector.broadcast %cst_2 : f32 to vector<16x1xf32>
    %5 = arith.divf %3, %4 : vector<16x1xf32>
    %6 = vector.broadcast %5 : vector<16x1xf32> to vector<16x128xf32>
    %7 = arith.subf %1, %6 : vector<16x128xf32>
    %8 = arith.mulf %7, %7 : vector<16x128xf32>
    %cst_3 = arith.constant dense<0.000000e+00> : vector<16xf32>
    %9 = vector.multi_reduction <add>, %8, %cst_3 [1] : vector<16x128xf32> to vector<16xf32>
    %10 = vector.shape_cast %9 : vector<16xf32> to vector<16x1xf32>
    %cst_4 = arith.constant 1.280000e+02 : f32
    %11 = vector.broadcast %cst_4 : f32 to vector<16x1xf32>
    %12 = arith.divf %10, %11 : vector<16x1xf32>
    %13 = vector.broadcast %5 : vector<16x1xf32> to vector<16x128xf32>
    %14 = arith.subf %1, %13 : vector<16x128xf32>
    %cst_5 = arith.constant 9.99999974E-6 : f32
    %15 = vector.broadcast %cst_5 : f32 to vector<16x1xf32>
    %16 = arith.addf %12, %15 : vector<16x1xf32>
    %17 = math.rsqrt %16 : vector<16x1xf32>
    %18 = vector.broadcast %17 : vector<16x1xf32> to vector<16x128xf32>
    %19 = arith.mulf %14, %18 : vector<16x128xf32>
    %c0_6 = arith.constant 0 : index
    %c0_7 = arith.constant 0 : index
    %20 = vector.load %arg2[%c0_6, %c0_7] : memref<1x128xf32, #tpu.memory_space<vmem>>, vector<1x128xf32>
    %21 = vector.broadcast %20 : vector<1x128xf32> to vector<16x128xf32>
    %22 = arith.mulf %19, %21 : vector<16x128xf32>
    %c0_8 = arith.constant 0 : index
    %c0_9 = arith.constant 0 : index
    %23 = vector.load %arg3[%c0_8, %c0_9] : memref<1x128xf32, #tpu.memory_space<vmem>>, vector<1x128xf32>
    %24 = vector.broadcast %23 : vector<1x128xf32> to vector<16x128xf32>
    %25 = arith.addf %22, %24 : vector<16x128xf32>
    %26 = arith.truncf %25 : vector<16x128xf32> to vector<16x128xbf16>
    %c0_10 = arith.constant 0 : index
    %c0_11 = arith.constant 0 : index
    %27 = vector.load %arg4[%c0_10, %c0_11] : memref<128x384xbf16, #tpu.memory_space<vmem>>, vector<128x384xbf16>
    %cst_12 = arith.constant dense<0.000000e+00> : vector<16x384xf32>
    %28 = tpu.matmul %26, %27, %cst_12 {dimension_numbers = #tpu.dot_dimension_numbers<[1], [0], [0], [1], [0, 0, 1, 1], [], []>} : vector<16x128xbf16>, vector<128x384xbf16>, vector<16x384xf32> -> vector<16x384xf32>
    %29 = vector.extract_strided_slice %28 {offsets = [0, 0], sizes = [16, 128], strides = [1, 1]} : vector<16x384xf32> to vector<16x128xf32>
    %30 = vector.extract_strided_slice %28 {offsets = [0, 128], sizes = [16, 128], strides = [1, 1]} : vector<16x384xf32> to vector<16x128xf32>
    %31 = vector.extract_strided_slice %28 {offsets = [0, 256], sizes = [16, 128], strides = [1, 1]} : vector<16x384xf32> to vector<16x128xf32>
    %32 = arith.mulf %29, %29 : vector<16x128xf32>
    %c0_13 = arith.constant 0 : index
    %c0_14 = arith.constant 0 : index
    %33 = vector.load %arg13[%c0_13, %c0_14] : memref<128x128xf32, #tpu.memory_space<vmem>>, vector<128x128xf32>
    %cst_15 = arith.constant dense<0.000000e+00> : vector<16x128xf32>
    %34 = tpu.matmul %32, %33, %cst_15 {dimension_numbers = #tpu.dot_dimension_numbers<[1], [0], [0], [1], [0, 0, 1, 1], [], []>} : vector<16x128xf32>, vector<128x128xf32>, vector<16x128xf32> -> vector<16x128xf32>
    %cst_16 = arith.constant 1.1920929E-7 : f32
    %35 = vector.broadcast %cst_16 : f32 to vector<16x128xf32>
    %36 = arith.addf %34, %35 : vector<16x128xf32>
    %37 = math.rsqrt %36 : vector<16x128xf32>
    %38 = arith.mulf %29, %37 : vector<16x128xf32>
    %c0_17 = arith.constant 0 : index
    %c0_18 = arith.constant 0 : index
    %39 = vector.load %arg12[%c0_17, %c0_18] : memref<128x128xf32, #tpu.memory_space<vmem>>, vector<128x128xf32>
    %cst_19 = arith.constant dense<0.000000e+00> : vector<16x128xf32>
    %40 = tpu.matmul %38, %39, %cst_19 {dimension_numbers = #tpu.dot_dimension_numbers<[1], [0], [0], [1], [0, 0, 1, 1], [], []>} : vector<16x128xf32>, vector<128x128xf32>, vector<16x128xf32> -> vector<16x128xf32>
    %c0_20 = arith.constant 0 : index
    %c0_21 = arith.constant 0 : index
    %41 = vector.load %arg10[%c0_20, %c0_21] : memref<16x128xf32, #tpu.memory_space<vmem>>, vector<16x128xf32>
    %42 = arith.mulf %38, %41 : vector<16x128xf32>
    %c0_22 = arith.constant 0 : index
    %c0_23 = arith.constant 0 : index
    %43 = vector.load %arg11[%c0_22, %c0_23] : memref<16x128xf32, #tpu.memory_space<vmem>>, vector<16x128xf32>
    %44 = arith.mulf %40, %43 : vector<16x128xf32>
    %45 = arith.addf %42, %44 : vector<16x128xf32>
    %46 = arith.mulf %30, %30 : vector<16x128xf32>
    %c0_24 = arith.constant 0 : index
    %c0_25 = arith.constant 0 : index
    %47 = vector.load %arg13[%c0_24, %c0_25] : memref<128x128xf32, #tpu.memory_space<vmem>>, vector<128x128xf32>
    %cst_26 = arith.constant dense<0.000000e+00> : vector<16x128xf32>
    %48 = tpu.matmul %46, %47, %cst_26 {dimension_numbers = #tpu.dot_dimension_numbers<[1], [0], [0], [1], [0, 0, 1, 1], [], []>} : vector<16x128xf32>, vector<128x128xf32>, vector<16x128xf32> -> vector<16x128xf32>
    %cst_27 = arith.constant 1.1920929E-7 : f32
    %49 = vector.broadcast %cst_27 : f32 to vector<16x128xf32>
    %50 = arith.addf %48, %49 : vector<16x128xf32>
    %51 = math.rsqrt %50 : vector<16x128xf32>
    %52 = arith.mulf %30, %51 : vector<16x128xf32>
    %c0_28 = arith.constant 0 : index
    %c0_29 = arith.constant 0 : index
    %53 = vector.load %arg12[%c0_28, %c0_29] : memref<128x128xf32, #tpu.memory_space<vmem>>, vector<128x128xf32>
    %cst_30 = arith.constant dense<0.000000e+00> : vector<16x128xf32>
    %54 = tpu.matmul %52, %53, %cst_30 {dimension_numbers = #tpu.dot_dimension_numbers<[1], [0], [0], [1], [0, 0, 1, 1], [], []>} : vector<16x128xf32>, vector<128x128xf32>, vector<16x128xf32> -> vector<16x128xf32>
    %c0_31 = arith.constant 0 : index
    %c0_32 = arith.constant 0 : index
    %55 = vector.load %arg10[%c0_31, %c0_32] : memref<16x128xf32, #tpu.memory_space<vmem>>, vector<16x128xf32>
    %56 = arith.mulf %52, %55 : vector<16x128xf32>
    %c0_33 = arith.constant 0 : index
    %c0_34 = arith.constant 0 : index
    %57 = vector.load %arg11[%c0_33, %c0_34] : memref<16x128xf32, #tpu.memory_space<vmem>>, vector<16x128xf32>
    %58 = arith.mulf %54, %57 : vector<16x128xf32>
    %59 = arith.addf %56, %58 : vector<16x128xf32>
    %60 = arith.truncf %59 : vector<16x128xf32> to vector<16x128xbf16>
    %61 = tpu.iota {dimensions = array<i32: 0>} : vector<16x16xi32>
    %62 = tpu.iota {dimensions = array<i32: 1>} : vector<16x16xi32>
    %63 = arith.cmpi sle, %62, %61 : vector<16x16xi32>
    %64 = tpu.iota {dimensions = array<i32: 1>} : vector<1x128xi32>
    %cst_35 = arith.constant 0.000000e+00 : f32
    %65 = vector.broadcast %cst_35 : f32 to vector<16x128xf32>
    %c0_i32 = arith.constant 0 : i32
    %66 = vector.broadcast %c0_i32 : i32 to vector<1x128xi32>
    %67 = arith.cmpi sge, %64, %66 : vector<1x128xi32>
    %c32_i32 = arith.constant 32 : i32
    %68 = vector.broadcast %c32_i32 : i32 to vector<1x128xi32>
    %69 = arith.cmpi slt, %64, %68 : vector<1x128xi32>
    %70 = arith.andi %67, %69 : vector<1x128xi1>
    %cst_36 = arith.constant 0.000000e+00 : f32
    %71 = vector.shape_cast %70 : vector<1x128xi1> to vector<1x128xi1>
    %72 = vector.broadcast %71 : vector<1x128xi1> to vector<16x128xi1>
    %73 = vector.broadcast %cst_36 : f32 to vector<16x128xf32>
    %74 = arith.select %72, %45, %73 : vector<16x128xi1>, vector<16x128xf32>
    %75 = arith.truncf %74 : vector<16x128xf32> to vector<16x128xbf16>
    %cst_37 = arith.constant dense<0.000000e+00> : vector<16x16xf32>
    %76 = tpu.matmul %75, %60, %cst_37 {dimension_numbers = #tpu.dot_dimension_numbers<[1], [1], [0], [0], [0, 0, 1, 0], [], []>} : vector<16x128xbf16>, vector<16x128xbf16>, vector<16x16xf32> -> vector<16x16xf32>
    %cst_38 = arith.constant 1.200000e-01 : f32
    %77 = vector.broadcast %cst_38 : f32 to vector<16x16xf32>
    %78 = arith.mulf %76, %77 : vector<16x16xf32>
    %cst_39 = arith.constant -1.000000e+30 : f32
    %79 = vector.broadcast %cst_39 : f32 to vector<16x16xf32>
    %80 = arith.select %63, %78, %79 : vector<16x16xi1>, vector<16x16xf32>
    %cst_40 = arith.constant dense<0xFF800000> : vector<16xf32>
    %81 = vector.multi_reduction <maximumf>, %80, %cst_40 [1] : vector<16x16xf32> to vector<16xf32>
    %82 = vector.shape_cast %81 : vector<16xf32> to vector<16x1xf32>
    %83 = vector.broadcast %82 : vector<16x1xf32> to vector<16x16xf32>
    %84 = arith.subf %80, %83 : vector<16x16xf32>
    %85 = math.exp %84 : vector<16x16xf32>
    %cst_41 = arith.constant dense<0.000000e+00> : vector<16xf32>
    %86 = vector.multi_reduction <add>, %85, %cst_41 [1] : vector<16x16xf32> to vector<16xf32>
    %87 = vector.shape_cast %86 : vector<16xf32> to vector<16x1xf32>
    %88 = tpu.reciprocal %87 {approx = true} : vector<16x1xf32> -> vector<16x1xf32>
    %89 = vector.broadcast %88 : vector<16x1xf32> to vector<16x16xf32>
    %90 = arith.mulf %85, %89 : vector<16x16xf32>
    %cst_42 = arith.constant 0.000000e+00 : f32
    %91 = vector.shape_cast %70 : vector<1x128xi1> to vector<1x128xi1>
    %92 = vector.broadcast %91 : vector<1x128xi1> to vector<16x128xi1>
    %93 = vector.broadcast %cst_42 : f32 to vector<16x128xf32>
    %94 = arith.select %92, %31, %93 : vector<16x128xi1>, vector<16x128xf32>
    %95 = arith.truncf %94 : vector<16x128xf32> to vector<16x128xbf16>
    %96 = arith.truncf %90 : vector<16x16xf32> to vector<16x16xbf16>
    %cst_43 = arith.constant dense<0.000000e+00> : vector<16x128xf32>
    %97 = tpu.matmul %96, %95, %cst_43 {dimension_numbers = #tpu.dot_dimension_numbers<[1], [0], [0], [1], [0, 0, 1, 1], [], []>} : vector<16x16xbf16>, vector<16x128xbf16>, vector<16x128xf32> -> vector<16x128xf32>
    %98 = arith.addf %65, %97 : vector<16x128xf32>
    %c32_i32_44 = arith.constant 32 : i32
    %99 = vector.broadcast %c32_i32_44 : i32 to vector<1x128xi32>
    %100 = arith.cmpi sge, %64, %99 : vector<1x128xi32>
    %c64_i32 = arith.constant 64 : i32
    %101 = vector.broadcast %c64_i32 : i32 to vector<1x128xi32>
    %102 = arith.cmpi slt, %64, %101 : vector<1x128xi32>
    %103 = arith.andi %100, %102 : vector<1x128xi1>
    %cst_45 = arith.constant 0.000000e+00 : f32
    %104 = vector.shape_cast %103 : vector<1x128xi1> to vector<1x128xi1>
    %105 = vector.broadcast %104 : vector<1x128xi1> to vector<16x128xi1>
    %106 = vector.broadcast %cst_45 : f32 to vector<16x128xf32>
    %107 = arith.select %105, %45, %106 : vector<16x128xi1>, vector<16x128xf32>
    %108 = arith.truncf %107 : vector<16x128xf32> to vector<16x128xbf16>
    %cst_46 = arith.constant dense<0.000000e+00> : vector<16x16xf32>
    %109 = tpu.matmul %108, %60, %cst_46 {dimension_numbers = #tpu.dot_dimension_numbers<[1], [1], [0], [0], [0, 0, 1, 0], [], []>} : vector<16x128xbf16>, vector<16x128xbf16>, vector<16x16xf32> -> vector<16x16xf32>
    %cst_47 = arith.constant 1.200000e-01 : f32
    %110 = vector.broadcast %cst_47 : f32 to vector<16x16xf32>
    %111 = arith.mulf %109, %110 : vector<16x16xf32>
    %cst_48 = arith.constant -1.000000e+30 : f32
    %112 = vector.broadcast %cst_48 : f32 to vector<16x16xf32>
    %113 = arith.select %63, %111, %112 : vector<16x16xi1>, vector<16x16xf32>
    %cst_49 = arith.constant dense<0xFF800000> : vector<16xf32>
    %114 = vector.multi_reduction <maximumf>, %113, %cst_49 [1] : vector<16x16xf32> to vector<16xf32>
    %115 = vector.shape_cast %114 : vector<16xf32> to vector<16x1xf32>
    %116 = vector.broadcast %115 : vector<16x1xf32> to vector<16x16xf32>
    %117 = arith.subf %113, %116 : vector<16x16xf32>
    %118 = math.exp %117 : vector<16x16xf32>
    %cst_50 = arith.constant dense<0.000000e+00> : vector<16xf32>
    %119 = vector.multi_reduction <add>, %118, %cst_50 [1] : vector<16x16xf32> to vector<16xf32>
    %120 = vector.shape_cast %119 : vector<16xf32> to vector<16x1xf32>
    %121 = tpu.reciprocal %120 {approx = true} : vector<16x1xf32> -> vector<16x1xf32>
    %122 = vector.broadcast %121 : vector<16x1xf32> to vector<16x16xf32>
    %123 = arith.mulf %118, %122 : vector<16x16xf32>
    %cst_51 = arith.constant 0.000000e+00 : f32
    %124 = vector.shape_cast %103 : vector<1x128xi1> to vector<1x128xi1>
    %125 = vector.broadcast %124 : vector<1x128xi1> to vector<16x128xi1>
    %126 = vector.broadcast %cst_51 : f32 to vector<16x128xf32>
    %127 = arith.select %125, %31, %126 : vector<16x128xi1>, vector<16x128xf32>
    %128 = arith.truncf %127 : vector<16x128xf32> to vector<16x128xbf16>
    %129 = arith.truncf %123 : vector<16x16xf32> to vector<16x16xbf16>
    %cst_52 = arith.constant dense<0.000000e+00> : vector<16x128xf32>
    %130 = tpu.matmul %129, %128, %cst_52 {dimension_numbers = #tpu.dot_dimension_numbers<[1], [0], [0], [1], [0, 0, 1, 1], [], []>} : vector<16x16xbf16>, vector<16x128xbf16>, vector<16x128xf32> -> vector<16x128xf32>
    %131 = arith.addf %98, %130 : vector<16x128xf32>
    %c64_i32_53 = arith.constant 64 : i32
    %132 = vector.broadcast %c64_i32_53 : i32 to vector<1x128xi32>
    %133 = arith.cmpi sge, %64, %132 : vector<1x128xi32>
    %c96_i32 = arith.constant 96 : i32
    %134 = vector.broadcast %c96_i32 : i32 to vector<1x128xi32>
    %135 = arith.cmpi slt, %64, %134 : vector<1x128xi32>
    %136 = arith.andi %133, %135 : vector<1x128xi1>
    %cst_54 = arith.constant 0.000000e+00 : f32
    %137 = vector.shape_cast %136 : vector<1x128xi1> to vector<1x128xi1>
    %138 = vector.broadcast %137 : vector<1x128xi1> to vector<16x128xi1>
    %139 = vector.broadcast %cst_54 : f32 to vector<16x128xf32>
    %140 = arith.select %138, %45, %139 : vector<16x128xi1>, vector<16x128xf32>
    %141 = arith.truncf %140 : vector<16x128xf32> to vector<16x128xbf16>
    %cst_55 = arith.constant dense<0.000000e+00> : vector<16x16xf32>
    %142 = tpu.matmul %141, %60, %cst_55 {dimension_numbers = #tpu.dot_dimension_numbers<[1], [1], [0], [0], [0, 0, 1, 0], [], []>} : vector<16x128xbf16>, vector<16x128xbf16>, vector<16x16xf32> -> vector<16x16xf32>
    %cst_56 = arith.constant 1.200000e-01 : f32
    %143 = vector.broadcast %cst_56 : f32 to vector<16x16xf32>
    %144 = arith.mulf %142, %143 : vector<16x16xf32>
    %cst_57 = arith.constant -1.000000e+30 : f32
    %145 = vector.broadcast %cst_57 : f32 to vector<16x16xf32>
    %146 = arith.select %63, %144, %145 : vector<16x16xi1>, vector<16x16xf32>
    %cst_58 = arith.constant dense<0xFF800000> : vector<16xf32>
    %147 = vector.multi_reduction <maximumf>, %146, %cst_58 [1] : vector<16x16xf32> to vector<16xf32>
    %148 = vector.shape_cast %147 : vector<16xf32> to vector<16x1xf32>
    %149 = vector.broadcast %148 : vector<16x1xf32> to vector<16x16xf32>
    %150 = arith.subf %146, %149 : vector<16x16xf32>
    %151 = math.exp %150 : vector<16x16xf32>
    %cst_59 = arith.constant dense<0.000000e+00> : vector<16xf32>
    %152 = vector.multi_reduction <add>, %151, %cst_59 [1] : vector<16x16xf32> to vector<16xf32>
    %153 = vector.shape_cast %152 : vector<16xf32> to vector<16x1xf32>
    %154 = tpu.reciprocal %153 {approx = true} : vector<16x1xf32> -> vector<16x1xf32>
    %155 = vector.broadcast %154 : vector<16x1xf32> to vector<16x16xf32>
    %156 = arith.mulf %151, %155 : vector<16x16xf32>
    %cst_60 = arith.constant 0.000000e+00 : f32
    %157 = vector.shape_cast %136 : vector<1x128xi1> to vector<1x128xi1>
    %158 = vector.broadcast %157 : vector<1x128xi1> to vector<16x128xi1>
    %159 = vector.broadcast %cst_60 : f32 to vector<16x128xf32>
    %160 = arith.select %158, %31, %159 : vector<16x128xi1>, vector<16x128xf32>
    %161 = arith.truncf %160 : vector<16x128xf32> to vector<16x128xbf16>
    %162 = arith.truncf %156 : vector<16x16xf32> to vector<16x16xbf16>
    %cst_61 = arith.constant dense<0.000000e+00> : vector<16x128xf32>
    %163 = tpu.matmul %162, %161, %cst_61 {dimension_numbers = #tpu.dot_dimension_numbers<[1], [0], [0], [1], [0, 0, 1, 1], [], []>} : vector<16x16xbf16>, vector<16x128xbf16>, vector<16x128xf32> -> vector<16x128xf32>
    %164 = arith.addf %131, %163 : vector<16x128xf32>
    %c96_i32_62 = arith.constant 96 : i32
    %165 = vector.broadcast %c96_i32_62 : i32 to vector<1x128xi32>
    %166 = arith.cmpi sge, %64, %165 : vector<1x128xi32>
    %c128_i32 = arith.constant 128 : i32
    %167 = vector.broadcast %c128_i32 : i32 to vector<1x128xi32>
    %168 = arith.cmpi slt, %64, %167 : vector<1x128xi32>
    %169 = arith.andi %166, %168 : vector<1x128xi1>
    %cst_63 = arith.constant 0.000000e+00 : f32
    %170 = vector.shape_cast %169 : vector<1x128xi1> to vector<1x128xi1>
    %171 = vector.broadcast %170 : vector<1x128xi1> to vector<16x128xi1>
    %172 = vector.broadcast %cst_63 : f32 to vector<16x128xf32>
    %173 = arith.select %171, %45, %172 : vector<16x128xi1>, vector<16x128xf32>
    %174 = arith.truncf %173 : vector<16x128xf32> to vector<16x128xbf16>
    %cst_64 = arith.constant dense<0.000000e+00> : vector<16x16xf32>
    %175 = tpu.matmul %174, %60, %cst_64 {dimension_numbers = #tpu.dot_dimension_numbers<[1], [1], [0], [0], [0, 0, 1, 0], [], []>} : vector<16x128xbf16>, vector<16x128xbf16>, vector<16x16xf32> -> vector<16x16xf32>
    %cst_65 = arith.constant 1.200000e-01 : f32
    %176 = vector.broadcast %cst_65 : f32 to vector<16x16xf32>
    %177 = arith.mulf %175, %176 : vector<16x16xf32>
    %cst_66 = arith.constant -1.000000e+30 : f32
    %178 = vector.broadcast %cst_66 : f32 to vector<16x16xf32>
    %179 = arith.select %63, %177, %178 : vector<16x16xi1>, vector<16x16xf32>
    %cst_67 = arith.constant dense<0xFF800000> : vector<16xf32>
    %180 = vector.multi_reduction <maximumf>, %179, %cst_67 [1] : vector<16x16xf32> to vector<16xf32>
    %181 = vector.shape_cast %180 : vector<16xf32> to vector<16x1xf32>
    %182 = vector.broadcast %181 : vector<16x1xf32> to vector<16x16xf32>
    %183 = arith.subf %179, %182 : vector<16x16xf32>
    %184 = math.exp %183 : vector<16x16xf32>
    %cst_68 = arith.constant dense<0.000000e+00> : vector<16xf32>
    %185 = vector.multi_reduction <add>, %184, %cst_68 [1] : vector<16x16xf32> to vector<16xf32>
    %186 = vector.shape_cast %185 : vector<16xf32> to vector<16x1xf32>
    %187 = tpu.reciprocal %186 {approx = true} : vector<16x1xf32> -> vector<16x1xf32>
    %188 = vector.broadcast %187 : vector<16x1xf32> to vector<16x16xf32>
    %189 = arith.mulf %184, %188 : vector<16x16xf32>
    %cst_69 = arith.constant 0.000000e+00 : f32
    %190 = vector.shape_cast %169 : vector<1x128xi1> to vector<1x128xi1>
    %191 = vector.broadcast %190 : vector<1x128xi1> to vector<16x128xi1>
    %192 = vector.broadcast %cst_69 : f32 to vector<16x128xf32>
    %193 = arith.select %191, %31, %192 : vector<16x128xi1>, vector<16x128xf32>
    %194 = arith.truncf %193 : vector<16x128xf32> to vector<16x128xbf16>
    %195 = arith.truncf %189 : vector<16x16xf32> to vector<16x16xbf16>
    %cst_70 = arith.constant dense<0.000000e+00> : vector<16x128xf32>
    %196 = tpu.matmul %195, %194, %cst_70 {dimension_numbers = #tpu.dot_dimension_numbers<[1], [0], [0], [1], [0, 0, 1, 1], [], []>} : vector<16x16xbf16>, vector<16x128xbf16>, vector<16x128xf32> -> vector<16x128xf32>
    %197 = arith.addf %164, %196 : vector<16x128xf32>
    %198 = arith.truncf %197 : vector<16x128xf32> to vector<16x128xbf16>
    %c0_71 = arith.constant 0 : index
    %c0_72 = arith.constant 0 : index
    %199 = vector.load %arg5[%c0_71, %c0_72] : memref<128x128xbf16, #tpu.memory_space<vmem>>, vector<128x128xbf16>
    %cst_73 = arith.constant dense<0.000000e+00> : vector<16x128xf32>
    %200 = tpu.matmul %198, %199, %cst_73 {dimension_numbers = #tpu.dot_dimension_numbers<[1], [0], [0], [1], [0, 0, 1, 1], [], []>} : vector<16x128xbf16>, vector<128x128xbf16>, vector<16x128xf32> -> vector<16x128xf32>
    %201 = arith.addf %1, %200 : vector<16x128xf32>
    %cst_74 = arith.constant dense<0.000000e+00> : vector<16xf32>
    %202 = vector.multi_reduction <add>, %201, %cst_74 [1] : vector<16x128xf32> to vector<16xf32>
    %203 = vector.shape_cast %202 : vector<16xf32> to vector<16x1xf32>
    %cst_75 = arith.constant 1.280000e+02 : f32
    %204 = vector.broadcast %cst_75 : f32 to vector<16x1xf32>
    %205 = arith.divf %203, %204 : vector<16x1xf32>
    %206 = vector.broadcast %205 : vector<16x1xf32> to vector<16x128xf32>
    %207 = arith.subf %201, %206 : vector<16x128xf32>
    %208 = arith.mulf %207, %207 : vector<16x128xf32>
    %cst_76 = arith.constant dense<0.000000e+00> : vector<16xf32>
    %209 = vector.multi_reduction <add>, %208, %cst_76 [1] : vector<16x128xf32> to vector<16xf32>
    %210 = vector.shape_cast %209 : vector<16xf32> to vector<16x1xf32>
    %cst_77 = arith.constant 1.280000e+02 : f32
    %211 = vector.broadcast %cst_77 : f32 to vector<16x1xf32>
    %212 = arith.divf %210, %211 : vector<16x1xf32>
    %213 = vector.broadcast %205 : vector<16x1xf32> to vector<16x128xf32>
    %214 = arith.subf %201, %213 : vector<16x128xf32>
    %cst_78 = arith.constant 9.99999974E-6 : f32
    %215 = vector.broadcast %cst_78 : f32 to vector<16x1xf32>
    %216 = arith.addf %212, %215 : vector<16x1xf32>
    %217 = math.rsqrt %216 : vector<16x1xf32>
    %218 = vector.broadcast %217 : vector<16x1xf32> to vector<16x128xf32>
    %219 = arith.mulf %214, %218 : vector<16x128xf32>
    %c0_79 = arith.constant 0 : index
    %c0_80 = arith.constant 0 : index
    %220 = vector.load %arg6[%c0_79, %c0_80] : memref<1x128xf32, #tpu.memory_space<vmem>>, vector<1x128xf32>
    %221 = vector.broadcast %220 : vector<1x128xf32> to vector<16x128xf32>
    %222 = arith.mulf %219, %221 : vector<16x128xf32>
    %c0_81 = arith.constant 0 : index
    %c0_82 = arith.constant 0 : index
    %223 = vector.load %arg7[%c0_81, %c0_82] : memref<1x128xf32, #tpu.memory_space<vmem>>, vector<1x128xf32>
    %224 = vector.broadcast %223 : vector<1x128xf32> to vector<16x128xf32>
    %225 = arith.addf %222, %224 : vector<16x128xf32>
    %226 = arith.truncf %225 : vector<16x128xf32> to vector<16x128xbf16>
    %c0_83 = arith.constant 0 : index
    %c0_84 = arith.constant 0 : index
    %227 = vector.load %arg8[%c0_83, %c0_84] : memref<128x512xbf16, #tpu.memory_space<vmem>>, vector<128x512xbf16>
    %cst_85 = arith.constant dense<0.000000e+00> : vector<16x512xf32>
    %228 = tpu.matmul %226, %227, %cst_85 {dimension_numbers = #tpu.dot_dimension_numbers<[1], [0], [0], [1], [0, 0, 1, 1], [], []>} : vector<16x128xbf16>, vector<128x512xbf16>, vector<16x512xf32> -> vector<16x512xf32>
    %cst_86 = arith.constant 0.000000e+00 : f32
    %229 = vector.broadcast %cst_86 : f32 to vector<16x512xf32>
    %230 = arith.maximumf %228, %229 : vector<16x512xf32>
    %231 = arith.mulf %230, %230 : vector<16x512xf32>
    %232 = arith.truncf %231 : vector<16x512xf32> to vector<16x512xbf16>
    %c0_87 = arith.constant 0 : index
    %c0_88 = arith.constant 0 : index
    %233 = vector.load %arg9[%c0_87, %c0_88] : memref<512x128xbf16, #tpu.memory_space<vmem>>, vector<512x128xbf16>
    %cst_89 = arith.constant dense<0.000000e+00> : vector<16x128xf32>
    %234 = tpu.matmul %232, %233, %cst_89 {dimension_numbers = #tpu.dot_dimension_numbers<[1], [0], [0], [1], [0, 0, 1, 1], [], []>} : vector<16x512xbf16>, vector<512x128xbf16>, vector<16x128xf32> -> vector<16x128xf32>
    %235 = arith.addf %201, %234 : vector<16x128xf32>
    %c0_90 = arith.constant 0 : index
    %c0_91 = arith.constant 0 : index
    %c0_92 = arith.constant 0 : index
    %236 = vector.load %arg14[%c0_90, %c0_91, %c0_92] : memref<1x16x128xf32, #tpu.memory_space<vmem>>, vector<1x16x128xf32>
    %237 = vector.shape_cast %236 : vector<1x16x128xf32> to vector<16x128xf32>
    %238 = vector.shape_cast %235 : vector<16x128xf32> to vector<1x16x128xf32>
    tpu.vector_store %arg14[%c0_90, %c0_91, %c0_92], %238 {strides = array<i32>} : memref<1x16x128xf32, #tpu.memory_space<vmem>>, vector<1x16x128xf32>,
    return
  }
  func.func @transform_0(%arg0: i32) -> (i32, i32, i32) {
    %c0_i32 = arith.constant 0 : i32
    %c0_i32_0 = arith.constant 0 : i32
    %c0_i32_1 = arith.constant 0 : i32
    return %arg0, %c0_i32, %c0_i32_0 : i32, i32, i32
  }
  func.func @transform_1(%arg0: i32) -> (i32, i32) {
    %c0_i32 = arith.constant 0 : i32
    %c0_i32_0 = arith.constant 0 : i32
    %c0_i32_1 = arith.constant 0 : i32
    return %c0_i32, %c0_i32_0 : i32, i32
  }
  func.func @transform_2(%arg0: i32) -> (i32, i32) {
    %c0_i32 = arith.constant 0 : i32
    %c0_i32_0 = arith.constant 0 : i32
    %c0_i32_1 = arith.constant 0 : i32
    return %c0_i32, %c0_i32_0 : i32, i32
  }
  func.func @transform_3(%arg0: i32) -> (i32, i32) {
    %c0_i32 = arith.constant 0 : i32
    %c0_i32_0 = arith.constant 0 : i32
    %c0_i32_1 = arith.constant 0 : i32
    return %c0_i32, %c0_i32_0 : i32, i32
  }
  func.func @transform_4(%arg0: i32) -> (i32, i32) {
    %c0_i32 = arith.constant 0 : i32
    %c0_i32_0 = arith.constant 0 : i32
    %c0_i32_1 = arith.constant 0 : i32
    return %c0_i32, %c0_i32_0 : i32, i32
  }
  func.func @transform_5(%arg0: i32) -> (i32, i32) {
    %c0_i32 = arith.constant 0 : i32
    %c0_i32_0 = arith.constant 0 : i32
    %c0_i32_1 = arith.constant 0 : i32
    return %c0_i32, %c0_i32_0 : i32, i32
  }
  func.func @transform_6(%arg0: i32) -> (i32, i32) {
    %c0_i32 = arith.constant 0 : i32
    %c0_i32_0 = arith.constant 0 : i32
    %c0_i32_1 = arith.constant 0 : i32
    return %c0_i32, %c0_i32_0 : i32, i32
  }
  func.func @transform_7(%arg0: i32) -> (i32, i32) {
    %c0_i32 = arith.constant 0 : i32
    %c0_i32_0 = arith.constant 0 : i32
    %c0_i32_1 = arith.constant 0 : i32
    return %c0_i32, %c0_i32_0 : i32, i32
  }
  func.func @transform_8(%arg0: i32) -> (i32, i32) {
    %c0_i32 = arith.constant 0 : i32
    %c0_i32_0 = arith.constant 0 : i32
    %c0_i32_1 = arith.constant 0 : i32
    return %c0_i32, %c0_i32_0 : i32, i32
  }
  func.func @transform_9(%arg0: i32) -> (i32, i32) {
    %c0_i32 = arith.constant 0 : i32
    %c0_i32_0 = arith.constant 0 : i32
    %c0_i32_1 = arith.constant 0 : i32
    return %c0_i32, %c0_i32_0 : i32, i32
  }
  func.func @transform_10(%arg0: i32) -> (i32, i32) {
    %c0_i32 = arith.constant 0 : i32
    %c0_i32_0 = arith.constant 0 : i32
    %c0_i32_1 = arith.constant 0 : i32
    return %c0_i32, %c0_i32_0 : i32, i32
  }
  func.func @transform_11(%arg0: i32) -> (i32, i32) {
    %c0_i32 = arith.constant 0 : i32
    %c0_i32_0 = arith.constant 0 : i32
    %c0_i32_1 = arith.constant 0 : i32
    return %c0_i32, %c0_i32_0 : i32, i32
  }
  func.func @transform_12(%arg0: i32) -> (i32, i32) {
    %c0_i32 = arith.constant 0 : i32
    %c0_i32_0 = arith.constant 0 : i32
    %c0_i32_1 = arith.constant 0 : i32
    return %c0_i32, %c0_i32_0 : i32, i32
  }
  func.func @transform_13(%arg0: i32) -> (i32, i32, i32) {
    %c0_i32 = arith.constant 0 : i32
    %c0_i32_0 = arith.constant 0 : i32
    %c0_i32_1 = arith.constant 0 : i32
    return %arg0, %c0_i32, %c0_i32_0 : i32, i32, i32
  }
}

</mosaic_0001>

<bundles_post_ra>
// kernel: block_forward.1
= control target key start
LH: loop header
LB: loop body
LE: loop exit
PB: predicated region body
PF: predicated region fallthrough
CT: control target
= control target key end

     0   :  { %s3888_s0 = inlined_call_operand.hbm [shape: f32[2,16,128], index: 0, kind: input, shape index: {}]   ;;  %s3889_s1 = inlined_call_operand.hbm [shape: f32[1,128], index: 1, kind: input, shape index: {}]   ;;  %s3890_s2 = inlined_call_operand.vmem [shape: f32[1,128], index: 2, kind: input, shape index: {}]   ;;  %s3891_s3 = inlined_call_operand.hbm [shape: bf16[128,384], index: 3, kind: input, shape index: {}]   ;;  %s3892_s4 = inlined_call_operand.hbm [shape: bf16[128,128], index: 4, kind: input, shape index: {}]   ;;  %s3893_s5 = inlined_call_operand.vmem [shape: f32[1,128], index: 5, kind: input, shape index: {}]   ;;  %s3894_s6 = inlined_call_operand.vmem [shape: f32[1,128], index: 6, kind: input, shape index: {}]   ;;  %s3895_s7 = inlined_call_operand.hbm [shape: bf16[128,512], index: 7, kind: input, shape index: {}]   ;;  %s3896_s8 = inlined_call_operand.hbm [shape: bf16[512,128], index: 8, kind: input, shape index: {}]   ;;  %s3897_s9 = inlined_call_operand.hbm [shape: f32[16,128], index: 9, kind: input, shape index: {}]   ;;  %s3898_s10 = inlined_call_operand.hbm [shape: f32[16,128], index: 10, kind: input, shape index: {}]   ;;  %s3899_s11 = inlined_call_operand.hbm [shape: f32[128,128], index: 11, kind: input, shape index: {}]   ;;  %s3900_s12 = inlined_call_operand.hbm [shape: f32[128,128], index: 12, kind: input, shape index: {}]   ;;  %s3901_s13 = inlined_call_operand.hbm [shape: f32[2,16,128], index: 13, kind: output, shape index: {}]  }
   0x1   :  { %3905 = sst [smem:[#allocation27_spill]] %s3889_s1 }
   0x2   :  { %3906 = sst [smem:[#allocation28_spill]] %s3891_s3 }
   0x3   :  { %3907 = sst [smem:[#allocation29_spill]] %s3892_s4 }
   0x4   :  { %3908 = sst [smem:[#allocation30_spill]] %s3894_s6 }
   0x5   :  { %3909 = sst [smem:[#allocation31_spill]] %s3895_s7 }
   0x6   :  { %3910 = sst [smem:[#allocation32_spill]] %s3896_s8 }
   0x7   :  { %3911 = sst [smem:[#allocation33_spill]] %s3901_s13 }
   0x8   :  { %18 = vsyncpa [#allocation3], 0 }
   0x9   :  { %20 = vsyncpa [#allocation3 + $0x1], 0 }
   0xa   :  { %21 = vsyncpa [#allocation6], 0 }
   0xb   :  { %22 = vsyncpa [#allocation9], 0 }
   0xc   :  { %23 = vsyncpa [#allocation12], 0 }
   0xd   :  { %24 = vsyncpa [#allocation15], 0 }
   0xe   :  { %25 = vsyncpa [#allocation18], 0 }
   0xf   :  { %26 = vsyncpa [#allocation4], 0 }
  0x10   :  { %28 = vsyncpa [#allocation4 + $0x1], 0  ;;  %s3467_s25 = smov 0   ;;  %s3469_s26 = smov 0  }
  0x11   :  { %s3471_s27 = smov 0   ;;  %s3473_s28 = smov 0  }
  0x12 LB: > { %s3912_s1 = sld [smem:[#allocation27_spill]]  ;;  %s3491_s15 = sadd.s32 4294967295, %s3375_s28   ;;  %s3375_s28 = sphi %s3473_s28, %s3937_s28   ;;  %s3371_s27 = sphi %s3471_s27, %s3936_s27   ;;  %s3367_s26 = sphi %s3469_s26, %s3935_s26   ;;  %s3363_s25 = sphi %s3467_s25, %s3934_s25  }
  0x13   : > { %p2244_p0 = scmp.ge.s32.totalorder %s3375_s28, 1  ;;  %p55_p1 = scmp.eq.s32.totalorder %s3491_s15, 0 }
  0x14   : > { %p343_p2 = scmp.lt.s32.totalorder %s3375_s28, 3  ;;  %s3377_s17 = smov [#allocation5]  }
  0x15   : > { %s357_s18 = sshll.u32 %s3377_s17, 4  ;;  %s3914_s4 = sld [smem:[#allocation29_spill]]  ;;  %s358_s18 = int_to_ptr.vmem [resolvable:$true] %s357_s18 }
  0x16   : > { %p3496_p3 = pnand %p2244_p0, %p343_p2  ;;  %s3378_s23 = smov [#allocation8]  }
  0x17   : > { %s385_s24 = sshll.u32 %s3378_s23, 4  ;;  %s3379_s29 = smov 64   ;;  %s386_s24 = int_to_ptr.vmem [resolvable:$true] %s385_s24 }
  0x18   : > { %s355_s14 = sshll.u32 %s3912_s1, 4  ;;  %p2825_p5 = pneg %p3496_p3  ;;  %s356_s14 = int_to_ptr.hbm [resolvable:$true] %s355_s14 }
  0x19   : > { %s3380_s30 = smov 4   ;;  %s3916_s8 = sld [smem:[#allocation32_spill]] }
  0x1a   : > { %p3508_p6 = pnand %p2825_p5, %p55_p1  ;;  %s3381_s1 = smov [#allocation11]  }
  0x1b   : > { %s383_s21 = sshll.u32 %s3914_s4, 4  ;;  %s419_s4 = sshll.u32 %s3381_s1, 4  ;;  %s384_s21 = int_to_ptr.hbm [resolvable:$true] %s383_s21  ;;  %s420_s4 = int_to_ptr.vmem [resolvable:$true] %s419_s4 }
  0x1c   : > { %2828 = dma.hbm_to_vmem [thread:$0]  (!%p3508_p6), %s356_s14, 16, %s358_s18, [#allocation6]  }
  0x1d   : > { %2834 = dma.hbm_to_vmem [thread:$0]  (!%p3508_p6), %s384_s21, 1024, %s386_s24, [#allocation9], %s3379_s29, %s3379_s29, %s3380_s30  }
  0x1e   : > { %s445_s6 = sshll.u32 %s3898_s10, 4  ;;  %s3382_s14 = smov [#allocation14]   ;;  %s446_s6 = int_to_ptr.hbm [resolvable:$true] %s445_s6 }
  0x1f   : > { %s417_s20 = sshll.u32 %s3916_s8, 4  ;;  %s447_s18 = sshll.u32 %s3382_s14, 4  ;;  %s418_s20 = int_to_ptr.hbm [resolvable:$true] %s417_s20  ;;  %s448_s18 = int_to_ptr.vmem [resolvable:$true] %s447_s18 }
  0x20   : > { %2840 = dma.hbm_to_vmem [thread:$0]  (!%p3508_p6), %s418_s20, 4096, %s420_s4, [#allocation12], %s3379_s29, %s3379_s29, %s3380_s30  }
  0x21   : > { %s3917_s3 = sld [smem:[#allocation28_spill]]  ;;  %s3903_s19 = smov 128  }
  0x22   : > { %s3904_s1 = smov 8   ;;  %s3385_s4 = smov [#allocation7]  }
  0x23   : > { %2846 = dma.hbm_to_vmem [thread:$0]  (!%p3508_p6), %s446_s6, 256, %s448_s18, [#allocation15], %s3903_s19, %s3903_s19, %s3904_s1  }
  0x24   : > { %s371_s13 = sshll.u32 %s3385_s4, 4  ;;  %s3918_s7 = sld [smem:[#allocation31_spill]]  ;;  %s372_s13 = int_to_ptr.vmem [resolvable:$true] %s371_s13 }
  0x25   : > { %s3386_s23 = smov 192   ;;  %s3387_s14 = smov 12  }
  0x26   : > { %s3388_s21 = smov [#allocation10]   ;;  %s3390_s8 = smov 16  }
  0x27   : > { %s369_s17 = sshll.u32 %s3917_s3, 4  ;;  %s405_s24 = sshll.u32 %s3388_s21, 4  ;;  %s370_s17 = int_to_ptr.hbm [resolvable:$true] %s369_s17  ;;  %s406_s24 = int_to_ptr.vmem [resolvable:$true] %s405_s24 }
  0x28   : > { %2831 = dma.hbm_to_vmem [thread:$0]  (!%p3508_p6), %s370_s17, 3072, %s372_s13, [#allocation6], %s3386_s23, %s3386_s23, %s3387_s14  }
  0x29   : > { %s3389_s3 = smov 256   ;;  %s431_s4 = sshll.u32 %s3897_s9, 4  ;;  %s432_s4 = int_to_ptr.hbm [resolvable:$true] %s431_s4 }
  0x2a   : > { %s403_s20 = sshll.u32 %s3918_s7, 4  ;;  %s3391_s29 = smov [#allocation13]   ;;  %s404_s20 = int_to_ptr.hbm [resolvable:$true] %s403_s20 }
  0x2b   : > { %2837 = dma.hbm_to_vmem [thread:$0]  (!%p3508_p6), %s404_s20, 4096, %s406_s24, [#allocation9], %s3389_s3, %s3389_s3, %s3390_s8  }
  0x2c   : > { %s433_s30 = sshll.u32 %s3391_s29, 4  ;;  %s459_s23 = sshll.u32 %s3899_s11, 4  ;;  %s434_s30 = int_to_ptr.vmem [resolvable:$true] %s433_s30  ;;  %s460_s23 = int_to_ptr.hbm [resolvable:$true] %s459_s23 }
  0x2d   : > { %2843 = dma.hbm_to_vmem [thread:$0]  (!%p3508_p6), %s432_s4, 256, %s434_s30, [#allocation12], %s3903_s19, %s3903_s19, %s3904_s1  }
  0x2e   : > { %s3392_s3 = smov [#allocation16]   ;;  %s473_s21 = sshll.u32 %s3900_s12, 4  ;;  %s474_s21 = int_to_ptr.hbm [resolvable:$true] %s473_s21 }
  0x2f   : > { %s461_s8 = sshll.u32 %s3392_s3, 4  ;;  %s3393_s24 = smov [#allocation17]   ;;  %s462_s8 = int_to_ptr.vmem [resolvable:$true] %s461_s8 }
  0x30   : > { %2849 = dma.hbm_to_vmem [thread:$0]  (!%p3508_p6), %s460_s23, 2048, %s462_s8, [#allocation15], %s3903_s19, %s3903_s19, %s3904_s1  }
  0x31   : > { %s475_s6 = sshll.u32 %s3393_s24, 4  ;;  %s2243_s18 = sadd.s32 4294967294, %s3375_s28   ;;  %s476_s6 = int_to_ptr.vmem [resolvable:$true] %s475_s6 }
  0x32   : > { %2852 = dma.hbm_to_vmem [thread:$0]  (!%p3508_p6), %s474_s21, 2048, %s476_s6, [#allocation18], %s3903_s19, %s3903_s19, %s3904_s1  }
  0x33   : > { %s3565_s4 = sadd.s32 1, %s3375_s28   ;;  %s41_s29 = sadd.s32 1, %s3371_s27 }
  0x34   : > { %s38_s30 = ssub.s32 %s3375_s28, %s3565_s4  ;;  %p48_p7 = scmp.ne.s32.totalorder %s3371_s27, %s3367_s26 }
  0x35   : > { %p39_p8 = scmp.eq.s32.totalorder %s38_s30, 0  ;;  %p49_p9 = scmp.eq.s32.totalorder %s3375_s28, 0 }
  0x36   : > { %p54_p10 = scmp.ne.s32.totalorder %s3367_s26, %s3363_s25  ;;  %p330_p11 = scmp.eq.s32.totalorder %s3491_s15, 1 }
  0x37   : > { %s3577_s17 = scalar_select %p39_p8, %s3371_s27, %s41_s29  }
  0x38   : > { %p3581_p12 = por %p55_p1, %p54_p10  ;;  %p3585_p13 = por %p330_p11, %p48_p7 }
  0x39   : > { %p336_p0 = scmp.eq.s32.totalorder %s2243_s18, 1  ;;  %p50_p2 = por %p49_p9, %p48_p7 }
  0x3a   : > { %s489_s23 = sand.u32 1, %s3371_s27   ;;  %p2870_p6 = scmp.lt.s32.totalorder %s3375_s28, 2 }
  0x3b   : > { %p3590_p5 = por %p336_p0, %p54_p10  ;;  %s2255_s8 = sshll.u32 %s489_s23, 4 }
  0x3c   : > { %s2687_s20 = sshll.u32 %s3375_s28, 4  ;;  %s493_s29 = scalar_lea.vmem [#allocation2], %s2255_s8 }
  0x3d   : > { %s498_s24 = scalar_lea.hbm %s3888_s0, %s2687_s20  ;;  %s501_s30 = sshll.u32 %s493_s29, 4  ;;  %s502_s30 = int_to_ptr.vmem [resolvable:$true] %s501_s30 }
  0x3e   : > { %s499_s6 = sshll.u32 %s498_s24, 4  ;;  %p3599_p8 = pnand %p2870_p6, %p50_p2  ;;  %s500_s6 = int_to_ptr.hbm [resolvable:$true] %s499_s6 }
  0x3f   : > { %s490_s19 = scalar_lea.sflag [#allocation3], %s489_s23  ;;  %s3259_s1 = sshra.s32 %s500_s6, 4  ;;  %s3260_s1 = int_to_ptr.hbm [resolvable:$true] %s3259_s1 }
  0x40   : > { %s3261_s7 = scalar_lea.hbm %s3260_s1, 16  ;;  %p3263_p9 = pneg %p3599_p8 }
  0x41   : > { %p3262_p7 = scmp.ne.s32.totalorder %s3260_s1, %s3261_s7  ;;  %s3266_s8 = scalar_lea.hbm %s3888_s0, 32 }
  0x42   : > { %p3267_p0 = scmp.lt.s32.totalorder %s3260_s1, %s3888_s0  ;;  %p3268_p2 = scmp.lt.s32.totalorder %s3266_s8, %s3261_s7 }
  0x43   : > { %p3264_p10 = pnand %p3263_p9, %p3262_p7 }
  0x44   : > { %p3269_p6 = por %p3268_p2, %p3267_p0 }
  0x45   : > { %p3265_p11 = pneg %p3264_p10 }
  0x47   : > { %p3270_p4 = pnand %p3269_p6, %p3265_p11 }
  0x49   : > { %3273 = shalt.err (!%p3270_p4)
}
  0x4a   : > { %s3923_s23 = smov 8   ;;  %s3924_s29 = smov 128  }
  0x4b   : > { %2856 = dma.hbm_to_vmem [thread:$0]  (!%p3599_p8), %s500_s6, 256, %s502_s30, %s490_s19, %s3924_s29, %s3924_s29, %s3923_s23  }
  0x4c   : > { %513 = sbr.rel (%p3496_p3) target bundleno = 2468 (0x9a4), region = 72  ;;  %s3619_s20 = sand.u32 (!%p3496_p3), 1, %s3367_s26  }
  0x4d   : > { %s2259_s7 = sshll.u32 (!%p3496_p3), %s3619_s20, 4  ;;  %s516_s1 = scalar_lea.sflag (!%p3496_p3), [#allocation3], %s3619_s20 }
  0x4e   : > { %s3625_s14 = scalar_lea.vmem (!%p3496_p3), [#allocation2], %s2259_s7 }
  0x51   : > { %3334 = dma.done.wait (%p3581_p12), %s516_s1, 256  }
  0x52   : > { %3336 = vsyncadd (%p3581_p12), %s516_s1, 4294967040 }
  0x53   : > { %3338 = dma.done.wait (%p55_p1), [#allocation6], 3088  }
  0x54   : > { %3340 = vsyncadd (%p55_p1), [#allocation6], 4294964208 }
  0x55   : > { %3342 = dma.done.wait (%p55_p1), [#allocation9], 5120  }
  0x56   : > { %3344 = vsyncadd (%p55_p1), [#allocation9], 4294962176 }
  0x57   : > { %3346 = dma.done.wait (%p55_p1), [#allocation12], 4352  }
  0x58   : > { %3348 = vsyncadd (%p55_p1), [#allocation12], 4294962944 }
  0x59   : > { %3350 = dma.done.wait (%p55_p1), [#allocation15], 2304  }
  0x5a   : > { %3352 = vsyncadd (%p55_p1), [#allocation15], 4294964992 }
  0x5b   : > { %3354 = dma.done.wait (%p55_p1), [#allocation18], 2048  }
  0x5c   : > { %3356 = vsyncadd (%p55_p1), [#allocation18], 4294965248  ;;  %v609_v0 = vld [vmem:[%s3625_s14] sm:$0xff]  ;;  %v610_v1 = vld [vmem:[%s3625_s14 + $0x8] sm:$0xff]  ;;  %v3394_v2 = vmov 128.0   ;;  %s3931_s8 = sld [smem:[#allocation30_spill]] }
  0x5d   : > { %611 = vadd.xlane.f32.xlu0 %v609_v0  ;;  %2937 = vrcp.f32 %v3394_v2  ;;  %v2356_v17 = vld [vmem:[#allocation7 + $0xa8] sm:$0xf]  ;;  %v2710_v18 = vld [vmem:[#allocation7 + $0xb0] sm:$0xf0]  ;;  %v2709_v19 = vld [vmem:[#allocation7 + $0xac] sm:$0xf] }
  0x5e   : > { %v2357_v20 = vor.u32 %v2710_v18, %v2356_v17  ;;  %v2358_v21 = vld [vmem:[#allocation7 + $0xb4] sm:$0xf0]  ;;  %v2364_v22 = vld [vmem:[#allocation7 + $0xb0] sm:$0xf]  ;;  %v2711_v23 = vld [vmem:[#allocation7 + $0xb8] sm:$0xf0] }
  0x5f   : > { %v2361_v24 = vor.u32 %v2709_v19, %v2358_v21  ;;  %v2365_v25 = vor.u32 %v2711_v23, %v2364_v22  ;;  %v2344_v26 = vld [vmem:[#allocation7 + $0x90] sm:$0xf]  ;;  %v2707_v27 = vld [vmem:[#allocation7 + $0x98] sm:$0xf0]  ;;  %v2706_v28 = vld [vmem:[#allocation7 + $0x94] sm:$0xf] }
  0x60   : > { %831 = vmatpush.bf16.msra.mxu0 %v2357_v20  ;;  %v2345_v29 = vor.u32 %v2707_v27, %v2344_v26  ;;  %v2346_v30 = vld [vmem:[#allocation7 + $0x9c] sm:$0xf0]  ;;  %v2352_v31 = vld [vmem:[#allocation7 + $0x98] sm:$0xf]  ;;  %v2708_v32 = vld [vmem:[#allocation7 + $0xa0] sm:$0xf0] }
  0x61   : > { %845 = vmatpush.bf16.msra.mxu1 %v2361_v24  ;;  %859 = vmatpush.bf16.msra.mxu2 %v2365_v25  ;;  %v2349_v33 = vor.u32 %v2706_v28, %v2346_v30  ;;  %v2353_v34 = vor.u32 %v2708_v32, %v2352_v31  ;;  %v2332_v35 = vld [vmem:[#allocation7 + $0x78] sm:$0xf]  ;;  %v2704_v36 = vld [vmem:[#allocation7 + $0x80] sm:$0xf0]  ;;  %v2703_v37 = vld [vmem:[#allocation7 + $0x7c] sm:$0xf] }
  0x62   : > { %v2333_v38 = vor.u32 %v2704_v36, %v2332_v35  ;;  %v2334_v39 = vld [vmem:[#allocation7 + $0x84] sm:$0xf0]  ;;  %v2340_v40 = vld [vmem:[#allocation7 + $0x80] sm:$0xf]  ;;  %v2705_v41 = vld [vmem:[#allocation7 + $0x88] sm:$0xf0] }
  0x63   : > { %v2938_v3 = vpop.eup %2937  ;;  %v2337_v42 = vor.u32 %v2703_v37, %v2334_v39  ;;  %v2341_v43 = vor.u32 %v2705_v41, %v2340_v40  ;;  %v2320_v44 = vld [vmem:[#allocation7 + $0x60] sm:$0xf]  ;;  %v2701_v45 = vld [vmem:[#allocation7 + $0x68] sm:$0xf0]  ;;  %v2700_v46 = vld [vmem:[#allocation7 + $0x64] sm:$0xf] }
  0x64   : > { %v616_v4 = vmul.f32 128.0, %v2938_v3  ;;  %vm620_vm0 = vweird.f32 %v2938_v3  ;;  %832 = vmatpush.bf16.msra.mxu0 %v2345_v29  ;;  %v2321_v47 = vor.u32 %v2701_v45, %v2320_v44  ;;  %v2322_v48 = vld [vmem:[#allocation7 + $0x6c] sm:$0xf0]  ;;  %v2328_v49 = vld [vmem:[#allocation7 + $0x68] sm:$0xf]  ;;  %v890_v32 = vld [vmem:[#allocation17 + $0x78] sm:$0xff] }
  0x65   : > { %613 = vadd.xlane.f32.xlu0 %v610_v1  ;;  %846 = vmatpush.bf16.msra.mxu1 %v2349_v33  ;;  %v2702_v50 = vld [vmem:[#allocation7 + $0x70] sm:$0xf0]  ;;  %v2325_v51 = vor.u32 %v2700_v46, %v2322_v48  ;;  %v2308_v53 = vld [vmem:[#allocation7 + $0x48] sm:$0xf]  ;;  %v2697_v55 = vld [vmem:[#allocation7 + $0x4c] sm:$0xf] }
  0x66   : > { %v617_v5 = vsub.f32 1.0, %v616_v4  ;;  %860 = vmatpush.bf16.msra.mxu2 %v2353_v34  ;;  %v2329_v52 = vor.u32 %v2702_v50, %v2328_v49  ;;  %v2698_v54 = vld [vmem:[#allocation7 + $0x50] sm:$0xf0]  ;;  %v2310_v57 = vld [vmem:[#allocation7 + $0x54] sm:$0xf0]  ;;  %891 = vmatpush.msra.mxu3 %v890_v32  ;;  %v888_v35 = vld [vmem:[#allocation17 + $0x68] sm:$0xff] }
  0x67   : > { %v2309_v56 = vor.u32 %v2698_v54, %v2308_v53  ;;  %v2316_v58 = vld [vmem:[#allocation7 + $0x50] sm:$0xf]  ;;  %v2699_v59 = vld [vmem:[#allocation7 + $0x58] sm:$0xf0]  ;;  %v2313_v60 = vor.u32 %v2697_v55, %v2310_v57  ;;  %v2298_v2 = vld [vmem:[#allocation7 + $0x3c] sm:$0xf0] }
  0x68   : > { %v618_v6 = vmul.f32 %v2938_v3, %v617_v5  ;;  %833 = vmatpush.bf16.msra.mxu0 %v2333_v38  ;;  %v2317_v61 = vor.u32 %v2699_v59, %v2316_v58  ;;  %v2296_v62 = vld [vmem:[#allocation7 + $0x30] sm:$0xf]  ;;  %v2695_v63 = vld [vmem:[#allocation7 + $0x38] sm:$0xf0]  ;;  %v2696_v4 = vld [vmem:[#allocation7 + $0x40] sm:$0xf0] }
  0x69   : > { %847 = vmatpush.bf16.msra.mxu1 %v2337_v42  ;;  %v2272_v19 = vld [vmem:[#allocation7] sm:$0xf]  ;;  %v2689_v20 = vld [vmem:[#allocation7 + $0x8] sm:$0xf0]  ;;  %v2688_v21 = vld [vmem:[#allocation7 + $0x4] sm:$0xf] }
  0x6a   : > { %v619_v7 = vadd.f32 %v2938_v3, %v618_v6  ;;  %861 = vmatpush.bf16.msra.mxu2 %v2341_v43  ;;  %v2273_v23 = vor.u32 %v2689_v20, %v2272_v19  ;;  %v2274_v24 = vld [vmem:[#allocation7 + $0xc] sm:$0xf0]  ;;  %v2280_v25 = vld [vmem:[#allocation7 + $0x8] sm:$0xf]  ;;  %v2690_v26 = vld [vmem:[#allocation7 + $0x10] sm:$0xf0] }
  0x6b   : > { %v2277_v28 = vor.u32 %v2688_v21, %v2274_v24  ;;  %v2281_v29 = vor.u32 %v2690_v26, %v2280_v25  ;;  %v889_v33 = vld [vmem:[#allocation17 + $0x70] sm:$0xff]  ;;  %v951_v36 = vld [vmem:[#allocation16 + $0x78] sm:$0xff]  ;;  %v887_v41 = vld [vmem:[#allocation17 + $0x60] sm:$0xff]  ;;  %s2784_s21 = sshll.u32 %s3491_s15, 4  ;;  %s3932_s29 = sld [smem:[#allocation33_spill]] }
  0x6c   : > { %v3653_v8 = vsel %vm620_vm0, %v2938_v3, %v619_v7  ;;  %834 = vmatpush.bf16.msra.mxu0 %v2321_v47  ;;  %v2304_v3 = vld [vmem:[#allocation7 + $0x38] sm:$0xf]  ;;  %892 = vmatpush.msra.mxu3 %v889_v33  ;;  %v950_v39 = vld [vmem:[#allocation16 + $0x70] sm:$0xff]  ;;  %v949_v42 = vld [vmem:[#allocation16 + $0x68] sm:$0xff]  ;;  %s2069_s15 = scalar_lea.sflag [#allocation4], %s3619_s20 }
  0x6d   : > { %848 = vmatpush.bf16.msra.mxu1 %v2325_v51  ;;  %v2305_v6 = vor.u32 %v2696_v4, %v2304_v3  ;;  %v2284_v7 = vld [vmem:[#allocation7 + $0x18] sm:$0xf]  ;;  %v948_v45 = vld [vmem:[#allocation16 + $0x60] sm:$0xff]  ;;  %v885_v47 = vld [vmem:[#allocation17 + $0x50] sm:$0xff] }
  0x6e   : > { %862 = vmatpush.bf16.msra.mxu2 %v2329_v52  ;;  %893 = vmatpush.msra.mxu3 %v888_v35  ;;  %v886_v44 = vld [vmem:[#allocation17 + $0x58] sm:$0xff]  ;;  %v884_v50 = vld [vmem:[#allocation17 + $0x48] sm:$0xff]  ;;  %v946_v52 = vld [vmem:[#allocation16 + $0x50] sm:$0xff] }
  0x6f   : > { %v947_v48 = vld [vmem:[#allocation16 + $0x58] sm:$0xff]  ;;  %v883_v55 = vld [vmem:[#allocation17 + $0x40] sm:$0xff]  ;;  %v942_v19 = vld [vmem:[#allocation16 + $0x30] sm:$0xff] }
  0x70   : > { %835 = vmatpush.bf16.msra.mxu0 %v2309_v56  ;;  %894 = vmatpush.msra.mxu3 %v887_v41  ;;  %v945_v56 = vld [vmem:[#allocation16 + $0x48] sm:$0xff]  ;;  %v882_v58 = vld [vmem:[#allocation17 + $0x38] sm:$0xff]  ;;  %v879_v3 = vld [vmem:[#allocation17 + $0x20] sm:$0xff] }
  0x71   : > { %849 = vmatpush.bf16.msra.mxu1 %v2313_v60  ;;  %v941_v20 = vld [vmem:[#allocation16 + $0x28] sm:$0xff]  ;;  %v940_v21 = vld [vmem:[#allocation16 + $0x20] sm:$0xff]  ;;  %s2080_s1 = scalar_lea.hbm %s3932_s29, %s2784_s21  ;;  %s3309_s18 = scalar_lea.hbm %s3932_s29, 32 }
  0x72   : > { %863 = vmatpush.bf16.msra.mxu2 %v2317_v61  ;;  %895 = vmatpush.msra.mxu3 %v886_v44  ;;  %v881_v61 = vld [vmem:[#allocation17 + $0x30] sm:$0xff]  ;;  %v937_v24 = vld [vmem:[#allocation16 + $0x8] sm:$0xff]  ;;  %v936_v25 = vld [vmem:[#allocation16] sm:$0xff]  ;;  %s2083_s19 = sshll.u32 %s2080_s1, 4  ;;  %s2084_s19 = int_to_ptr.hbm [resolvable:$true] %s2083_s19 }
  0x73   : > { %s3303_s22 = sshra.s32 %s2084_s19, 4  ;;  %s3304_s22 = int_to_ptr.hbm [resolvable:$true] %s3303_s22 }
  0x74   : > { %896 = vmatpush.msra.mxu3 %v885_v47  ;;  %s3305_s6 = scalar_lea.hbm %s3304_s22, 16  ;;  %p3310_p12 = scmp.lt.s32.totalorder %s3304_s22, %s3932_s29 }
  0x75   : > { %p3306_p1 = scmp.ne.s32.totalorder %s3304_s22, %s3305_s6  ;;  %p3311_p8 = scmp.lt.s32.totalorder %s3309_s18, %s3305_s6 }
  0x76   : > { %864 = vmatpush.bf16.msra.mxu2 %v2305_v6  ;;  %897 = vmatpush.msra.mxu3 %v884_v50 }
  0x77   : > { %p3307_p3 = pnand %p3306_p1, %p3585_p13  ;;  %p3312_p7 = por %p3311_p8, %p3310_p12 }
  0x78   : > { %898 = vmatpush.msra.mxu3 %v883_v55 }
  0x79   : > { %p3308_p4 = pneg %p3307_p3 }
  0x7a   : > { %899 = vmatpush.msra.mxu3 %v882_v58 }
  0x7b   : > { %p3313_p9 = pnand %p3312_p7, %p3308_p4 }
  0x7c   : > { %900 = vmatpush.msra.mxu3 %v881_v61 }
  0xd0   : > { %v612_v9 = vpop.xlane.xlu0 %611 }
  0xd1   : > { %v622_v10 = vmul.f32 %v3653_v8, %v612_v9  ;;  %v2692_v9 = vld [vmem:[#allocation7 + $0x20] sm:$0xf0] }
  0xd3   : > { %v3656_v11 = vsub.f32 %v609_v0, %v622_v10  ;;  %v2694_v0 = vld [vmem:[#allocation7 + $0x34] sm:$0xf]  ;;  %v2691_v10 = vld [vmem:[#allocation7 + $0x1c] sm:$0xf] }
  0xd4   : > { %v2301_v5 = vor.u32 %v2694_v0, %v2298_v2 }
  0xd5   : > { %v626_v12 = vmul.f32 %v3656_v11, %v3656_v11 }
  0xd6   : > { %850 = vmatpush.bf16.msra.mxu1 %v2301_v5  ;;  %v878_v5 = vld [vmem:[#allocation17 + $0x18] sm:$0xff] }
  0xd7   : > { %628 = vadd.xlane.f32.xlu1 %v626_v12  ;;  %v2285_v12 = vor.u32 %v2692_v9, %v2284_v7  ;;  %v2934_v9 = vld [vmem:[%s3890_s2] ss:$0 sm:$0xff] }
  0xd8   : > { %v614_v13 = vpop.xlane.xlu0 %613 }
  0xd9   : > { %v623_v14 = vmul.f32 %v3653_v8, %v614_v13  ;;  %v2286_v13 = vld [vmem:[#allocation7 + $0x24] sm:$0xf0] }
  0xda   : > { %v2289_v17 = vor.u32 %v2691_v10, %v2286_v13 }
  0xdb   : > { %v3661_v15 = vsub.f32 %v610_v1, %v623_v14  ;;  %v2297_v1 = vor.u32 %v2695_v63, %v2296_v62  ;;  %v2292_v14 = vld [vmem:[#allocation7 + $0x20] sm:$0xf]  ;;  %v880_v63 = vld [vmem:[#allocation17 + $0x28] sm:$0xff] }
  0xdc   : > { %851 = vmatpush.bf16.msra.mxu1 %v2289_v17  ;;  %901 = vmatpush.msra.mxu3 %v880_v63  ;;  %v875_v17 = vld [vmem:[#allocation17] sm:$0xff] }
  0xdd   : > { %v627_v16 = vmul.f32 %v3661_v15, %v3661_v15  ;;  %836 = vmatpush.bf16.msra.mxu0 %v2297_v1  ;;  %v2933_v1 = vld [vmem:[#allocation5] ss:$0 sm:$0xff] }
  0xde   : > { %902 = vmatpush.msra.mxu3 %v879_v3 }
  0xdf   : > { %630 = vadd.xlane.f32.xlu1 %v627_v16  ;;  %v2693_v16 = vld [vmem:[#allocation7 + $0x28] sm:$0xf0] }
  0xe0   : > { %v2293_v18 = vor.u32 %v2693_v16, %v2292_v14  ;;  %852 = vmatpush.bf16.msra.mxu1 %v2277_v28  ;;  %903 = vmatpush.msra.mxu3 %v878_v5  ;;  %v944_v16 = vld [vmem:[#allocation16 + $0x40] sm:$0xff]  ;;  %v1062_v28 = vlaneseq }
  0xe1   : > { %837 = vmatpush.bf16.msra.mxu0 %v2285_v12 }
  0xe2   : > { %865 = vmatpush.bf16.msra.mxu2 %v2293_v18  ;;  %v943_v18 = vld [vmem:[#allocation16 + $0x38] sm:$0xff] }
  0xe4   : > { %987 = vmatpush.msrb.mxu1 %v890_v32 }
  0xe5   : > { %838 = vmatpush.bf16.msra.mxu0 %v2273_v23  ;;  %v938_v23 = vld [vmem:[#allocation16 + $0x10] sm:$0xff] }
  0xe6   : > { %866 = vmatpush.bf16.msra.mxu2 %v2281_v29  ;;  %988 = vmatpush.msrb.mxu1 %v889_v33 }
  0xe8   : > { %989 = vmatpush.msrb.mxu1 %v888_v35 }
  0xe9   : > { %952 = vmatpush.msrb.mxu0 %v951_v36 }
  0xea   : > { %1032 = vmatpush.msrb.mxu2 %v951_v36  ;;  %990 = vmatpush.msrb.mxu1 %v887_v41 }
  0xeb   : > { %953 = vmatpush.msrb.mxu0 %v950_v39 }
  0xec   : > { %1033 = vmatpush.msrb.mxu2 %v950_v39  ;;  %991 = vmatpush.msrb.mxu1 %v886_v44 }
  0xed   : > { %954 = vmatpush.msrb.mxu0 %v949_v42 }
  0xee   : > { %1034 = vmatpush.msrb.mxu2 %v949_v42  ;;  %992 = vmatpush.msrb.mxu1 %v885_v47 }
  0xef   : > { %955 = vmatpush.msrb.mxu0 %v948_v45 }
  0xf0   : > { %1035 = vmatpush.msrb.mxu2 %v948_v45  ;;  %993 = vmatpush.msrb.mxu1 %v884_v50 }
  0xf1   : > { %956 = vmatpush.msrb.mxu0 %v947_v48 }
  0xf2   : > { %1036 = vmatpush.msrb.mxu2 %v947_v48  ;;  %994 = vmatpush.msrb.mxu1 %v883_v55 }
  0xf3   : > { %957 = vmatpush.msrb.mxu0 %v946_v52 }
  0xf4   : > { %1037 = vmatpush.msrb.mxu2 %v946_v52  ;;  %995 = vmatpush.msrb.mxu1 %v882_v58 }
  0xf5   : > { %958 = vmatpush.msrb.mxu0 %v945_v56 }
  0xf6   : > { %1038 = vmatpush.msrb.mxu2 %v945_v56  ;;  %996 = vmatpush.msrb.mxu1 %v881_v61 }
  0xf7   : > { %959 = vmatpush.msrb.mxu0 %v944_v16 }
  0xf8   : > { %997 = vmatpush.msrb.mxu1 %v880_v63  ;;  %1039 = vmatpush.msrb.mxu2 %v944_v16 }
  0xf9   : > { %960 = vmatpush.msrb.mxu0 %v943_v18 }
  0xfa   : > { %998 = vmatpush.msrb.mxu1 %v879_v3  ;;  %1040 = vmatpush.msrb.mxu2 %v943_v18 }
  0xfb   : > { %961 = vmatpush.msrb.mxu0 %v942_v19 }
  0xfc   : > { %999 = vmatpush.msrb.mxu1 %v878_v5  ;;  %1041 = vmatpush.msrb.mxu2 %v942_v19 }
  0xfd   : > { %962 = vmatpush.msrb.mxu0 %v941_v20 }
  0xfe   : > { %1042 = vmatpush.msrb.mxu2 %v941_v20 }
  0xff   : > { %963 = vmatpush.msrb.mxu0 %v940_v21 }
 0x100   : > { %1043 = vmatpush.msrb.mxu2 %v940_v21  ;;  %v979_v21 = vld [vmem:[#allocation14] sm:$0xff] }
 0x14a   : > { %v629_v22 = vpop.xlane.xlu1 %628 }
 0x14b   : > { %v632_v27 = vmul.f32 %v629_v22, %v3653_v8  ;;  %v939_v22 = vld [vmem:[#allocation16 + $0x18] sm:$0xff] }
 0x14c   : > { %964 = vmatpush.msrb.mxu0 %v939_v22  ;;  %1044 = vmatpush.msrb.mxu2 %v939_v22  ;;  %v975_v22 = vld [vmem:[#allocation13] sm:$0xff] }
 0x14d   : > { %v634_v30 = vadd.f32 1e-05, %v632_v27 }
 0x14e   : > { %965 = vmatpush.msrb.mxu0 %v938_v23  ;;  %1045 = vmatpush.msrb.mxu2 %v938_v23  ;;  %v976_v23 = vld [vmem:[#allocation13 + $0x8] sm:$0xff] }
 0x14f   : > { %2939 = vrsqrt.f32 %v634_v30  ;;  %vm642_vm2 = vweird.f32 %v634_v30 }
 0x150   : > { %966 = vmatpush.msrb.mxu0 %v937_v24  ;;  %1046 = vmatpush.msrb.mxu2 %v937_v24  ;;  %v980_v24 = vld [vmem:[#allocation14 + $0x8] sm:$0xff] }
 0x152   : > { %v631_v31 = vpop.xlane.xlu1 %630  ;;  %967 = vmatpush.msrb.mxu0 %v936_v25  ;;  %1047 = vmatpush.msrb.mxu2 %v936_v25 }
 0x153   : > { %v633_v34 = vmul.f32 %v631_v31, %v3653_v8  ;;  %v3689_v31 = vand.u32 127, %v1062_v28 }
 0x155   : > { %v3667_v37 = vpop.eup %2939  ;;  %v3669_v38 = vadd.f32 1e-05, %v633_v34  ;;  %vm1122_vm7 = vcmp.ge.s32.totalorder %v3689_v31, 32  ;;  %vm1123_vm8 = vcmp.lt.s32.totalorder %v3689_v31, 64  ;;  %vm1070_vm10 = vcmp.lt.s32.totalorder %v3689_v31, 32 }
 0x156   : > { %v637_v40 = vmul.f32 %v3667_v37, %v634_v30  ;;  %vm643_vm1 = vweird.f32 %v3667_v37  ;;  %vm3701_vm9 = vmand %vm1122_vm7, %vm1123_vm8  ;;  %vm1279_vm11 = vcmp.ge.s32.totalorder %v3689_v31, 96 }
 0x157   : > { %2941 = vrsqrt.f32 %v3669_v38  ;;  %vm644_vm3 = vmor %vm642_vm2, %vm643_vm1  ;;  %vm652_vm5 = vweird.f32 %v3669_v38 }
 0x158   : > { %v638_v43 = vmul.f32 %v3667_v37, %v637_v40  ;;  %vm2369_vm12 = vmpackc.low %vm3701_vm9, %vm3701_vm9 }
 0x159   : > { %vm3710_vm13 = vmpackc.low %vm1070_vm10, %vm1070_vm10 }
 0x15a   : > { %v639_v46 = vmul.f32 0.5, %v638_v43  ;;  %vm3716_vm14 = vmpackc.low %vm1279_vm11, %vm1279_vm11 }
 0x15c   : > { %v640_v49 = vsub.f32 1.5, %v639_v46 }
 0x15d   : > { %v2942_v51 = vpop.eup %2941 }
 0x15e   : > { %v641_v53 = vmul.f32 %v3667_v37, %v640_v49  ;;  %v647_v54 = vmul.f32 %v2942_v51, %v3669_v38  ;;  %vm653_vm4 = vweird.f32 %v2942_v51 }
 0x15f   : > { %vm654_vm6 = vmor %vm652_vm5, %vm653_vm4 }
 0x160   : > { %v648_v57 = vmul.f32 %v2942_v51, %v647_v54  ;;  %v645_v59 = vsel %vm644_vm3, %v3667_v37, %v641_v53 }
 0x161   : > { %v656_v0 = vmul.f32 %v645_v59, %v3656_v11  ;;  %v877_v11 = vld [vmem:[#allocation17 + $0x10] sm:$0xff] }
 0x162   : > { %v649_v60 = vmul.f32 0.5, %v648_v57  ;;  %904 = vmatpush.msra.mxu3 %v877_v11  ;;  %1000 = vmatpush.msrb.mxu1 %v877_v11 }
 0x163   : > { %v662_v7 = vmul.f32 %v2933_v1, %v656_v0 }
 0x164   : > { %v650_v62 = vsub.f32 1.5, %v649_v60 }
 0x165   : > { %v668_v12 = vadd.f32 %v2934_v9, %v662_v7 }
 0x166   : > { %v651_v2 = vmul.f32 %v2942_v51, %v650_v62 }
 0x168   : > { %v655_v4 = vsel %vm654_vm6, %v2942_v51, %v651_v2 }
 0x169   : > { %v657_v6 = vmul.f32 %v655_v4, %v3661_v15  ;;  %v876_v15 = vld [vmem:[#allocation17 + $0x8] sm:$0xff] }
 0x16a   : > { %905 = vmatpush.msra.mxu3 %v876_v15  ;;  %1001 = vmatpush.msrb.mxu1 %v876_v15 }
 0x16b   : > { %v663_v10 = vmul.f32 %v2933_v1, %v657_v6 }
 0x16c   : > { %906 = vmatpush.msra.mxu3 %v875_v17  ;;  %1002 = vmatpush.msrb.mxu1 %v875_v17 }
 0x16d   : > { %v669_v13 = vadd.f32 %v2934_v9, %v663_v10 }
 0x16f   : > { %v670_v14 = vpack.c.bf16 %v669_v13, %v668_v12 }
 0x171   : > { %839 = vmatmul.bf16.vlgmr.msra.gmra.mxu0 %v670_v14  ;;  %853 = vmatmul.bf16.vlgmr.msra.gmra.mxu1 %v670_v14 }
 0x172   : > { %867 = vmatmul.bf16.vlgmr.msra.gmra.mxu2 %v670_v14 }
 0x1ee   : > { %v3684_v26 = vpop.f32.mrf.mxu0  ;;  %v854_v27 = vpop.f32.mrf.mxu1 }
 0x1ef   : > { %v985_v29 = vmul.f32 %v854_v27, %v854_v27  ;;  %v873_v30 = vmul.f32 %v3684_v26, %v3684_v26 }
 0x1f1   : > { %907 = vmatmul.f32.vlgmr.msra.gmra.mxu3 %v873_v30  ;;  %1003 = vmatmul.f32.vlgmr.msrb.gmra.mxu1 %v985_v29 }
 0x1f5   : > { %v868_v32 = vpop.f32.mrf.mxu2 }
 0x1f6   : > { %v3691_v33 = vpop.f32.mrf.mxu0  ;;  %v3693_v34 = vpop.f32.mrf.mxu1 }
 0x1f7   : > { %v874_v35 = vmul.f32 %v3691_v33, %v3691_v33  ;;  %v986_v36 = vmul.f32 %v3693_v34, %v3693_v34 }
 0x1f9   : > { %910 = vmatmul.f32.gmra.mxu3 %v874_v35  ;;  %1006 = vmatmul.f32.gmra.mxu1 %v986_v36 }
 0x1fd   : > { %v870_v38 = vpop.f32.mrf.mxu2 }
 0x1fe   : > { %v3714_v40 = vpack.c.bf16 %v870_v38, %v868_v32 }
 0x200   : > { %2374 = vmatpush.bf16.msk.msra.mxu0 %vm2369_vm12, %v3714_v40  ;;  %2378 = vmatpush.bf16.msk.msra.mxu1 %vm3710_vm13, %v3714_v40 }
 0x204   : > { %2392 = vmatpush.bf16.msk.msrb.mxu1 %vm3716_vm14, %v3714_v40 }
 0x26e   : > { %v1004_v42 = vpop.f32.mrf.mxu1 }
 0x26f   : > { %v1005_v43 = vadd.f32 1.1920929e-07, %v1004_v42 }
 0x271   : > { %2943 = vrsqrt.f32 %v1005_v43  ;;  %vm1016_vm0 = vweird.f32 %v1005_v43 }
 0x274   : > { %v908_v44 = vpop.f32.mrf.mxu3 }
 0x275   : > { %v909_v45 = vadd.f32 1.1920929e-07, %v908_v44 }
 0x276   : > { %v1007_v46 = vpop.f32.mrf.mxu1 }
 0x277   : > { %v2944_v47 = vpop.eup %2943  ;;  %2945 = vrsqrt.f32 %v909_v45  ;;  %v1008_v48 = vadd.f32 1.1920929e-07, %v1007_v46  ;;  %vm920_vm3 = vweird.f32 %v909_v45 }
 0x278   : > { %v1011_v49 = vmul.f32 %v2944_v47, %v1005_v43  ;;  %vm1017_vm15 = vweird.f32 %v2944_v47 }
 0x279   : > { %2947 = vrsqrt.f32 %v1008_v48  ;;  %vm1018_vm1 = vmor %vm1016_vm0, %vm1017_vm15  ;;  %vm1026_vm6 = vweird.f32 %v1008_v48  ;;  %vm1208_vm15 = vcmp.ge.s32.totalorder %v3689_v31, 64  ;;  %vm1209_vm0 = vcmp.lt.s32.totalorder %v3689_v31, 96 }
 0x27a   : > { %v1012_v50 = vmul.f32 %v2944_v47, %v1011_v49 }
 0x27c   : > { %v1013_v51 = vmul.f32 0.5, %v1012_v50  ;;  %v911_v52 = vpop.f32.mrf.mxu3 }
 0x27d   : > { %v2946_v53 = vpop.eup %2945  ;;  %v912_v54 = vadd.f32 1.1920929e-07, %v911_v52 }
 0x27e   : > { %v1014_v55 = vsub.f32 1.5, %v1013_v51  ;;  %v915_v56 = vmul.f32 %v2946_v53, %v909_v45  ;;  %vm921_vm2 = vweird.f32 %v2946_v53 }
 0x27f   : > { %v2948_v57 = vpop.eup %2947  ;;  %2949 = vrsqrt.f32 %v912_v54  ;;  %vm922_vm5 = vmor %vm920_vm3, %vm921_vm2  ;;  %vm930_vm10 = vweird.f32 %v912_v54  ;;  %vm1095_vm3 = vcmask 130048  }
 0x280   : > { %v916_v58 = vmul.f32 %v2946_v53, %v915_v56  ;;  %v1021_v59 = vmul.f32 %v2948_v57, %v1008_v48  ;;  %v1015_v60 = vmul.f32 %v2944_v47, %v1014_v55  ;;  %vm1027_vm4 = vweird.f32 %v2948_v57 }
 0x281   : > { %vm1028_vm7 = vmor %vm1026_vm6, %vm1027_vm4  ;;  %v3751_v48 = vshrl.u32 %v1062_v28, 7 }
 0x282   : > { %v917_v61 = vmul.f32 0.5, %v916_v58  ;;  %v1022_v62 = vmul.f32 %v2948_v57, %v1021_v59  ;;  %v1019_v63 = vsel %vm1018_vm1, %v2944_v47, %v1015_v60  ;;  %vm1210_vm1 = vmand %vm1208_vm15, %vm1209_vm0 }
 0x283   : > { %v1030_v0 = vmul.f32 %v1019_v63, %v854_v27  ;;  %vm2380_vm2 = vmpackc.low %vm1210_vm1, %vm1210_vm1 }
 0x284   : > { %v918_v1 = vsub.f32 1.5, %v917_v61  ;;  %v1023_v2 = vmul.f32 0.5, %v1022_v62 }
 0x285   : > { %v2950_v3 = vpop.eup %2949  ;;  %1048 = vmatmul.f32.vlgmr.msrb.gmra.mxu2 %v1030_v0  ;;  %v1055_v29 = vmul.f32 %v1030_v0, %v975_v22 }
 0x286   : > { %v1024_v4 = vsub.f32 1.5, %v1023_v2  ;;  %v925_v5 = vmul.f32 %v2950_v3, %v912_v54  ;;  %v919_v6 = vmul.f32 %v2946_v53, %v918_v1  ;;  %vm931_vm8 = vweird.f32 %v2950_v3 }
 0x287   : > { %vm932_vm11 = vmor %vm930_vm10, %vm931_vm8 }
 0x288   : > { %v926_v7 = vmul.f32 %v2950_v3, %v925_v5  ;;  %v923_v9 = vsel %vm922_vm5, %v2946_v53, %v919_v6  ;;  %v1025_v11 = vmul.f32 %v2948_v57, %v1024_v4 }
 0x289   : > { %v934_v10 = vmul.f32 %v923_v9, %v3684_v26 }
 0x28a   : > { %v927_v12 = vmul.f32 0.5, %v926_v7  ;;  %v1029_v13 = vsel %vm1028_vm7, %v2948_v57, %v1025_v11 }
 0x28b   : > { %968 = vmatmul.f32.vlgmr.msrb.gmra.mxu0 %v934_v10  ;;  %v1031_v14 = vmul.f32 %v1029_v13, %v3693_v34  ;;  %v977_v27 = vmul.f32 %v975_v22, %v934_v10 }
 0x28c   : > { %v928_v15 = vsub.f32 1.5, %v927_v12 }
 0x28d   : > { %1051 = vmatmul.f32.gmra.mxu2 %v1031_v14  ;;  %v1056_v34 = vmul.f32 %v1031_v14, %v976_v23 }
 0x28e   : > { %v929_v16 = vmul.f32 %v2950_v3, %v928_v15 }
 0x290   : > { %v933_v17 = vsel %vm932_vm11, %v2950_v3, %v929_v16 }
 0x291   : > { %v935_v18 = vmul.f32 %v933_v17, %v3691_v33 }
 0x293   : > { %971 = vmatmul.f32.gmra.mxu0 %v935_v18  ;;  %v978_v35 = vmul.f32 %v976_v23, %v935_v18 }
 0x308   : > { %v969_v19 = vpop.f32.mrf.mxu0  ;;  %v1049_v20 = vpop.f32.mrf.mxu2 }
 0x309   : > { %v981_v25 = vmul.f32 %v979_v21, %v969_v19  ;;  %v1057_v26 = vmul.f32 %v1049_v20, %v979_v21 }
 0x30b   : > { %v983_v42 = vadd.f32 %v981_v25, %v977_v27  ;;  %v1059_v43 = vadd.f32 %v1057_v26, %v1055_v29 }
 0x310   : > { %v972_v30 = vpop.f32.mrf.mxu0  ;;  %v1052_v32 = vpop.f32.mrf.mxu2 }
 0x311   : > { %v982_v36 = vmul.f32 %v980_v24, %v972_v30  ;;  %v1058_v38 = vmul.f32 %v1052_v32, %v980_v24 }
 0x313   : > { %v984_v33 = vadd.f32 %v982_v36, %v978_v35  ;;  %v1060_v44 = vadd.f32 %v1058_v38, %v1056_v34 }
 0x315   : > { %v3735_v45 = vpack.c.bf16 %v984_v33, %v983_v42  ;;  %v1061_v46 = vpack.c.bf16 %v1060_v44, %v1059_v43 }
 0x317   : > { %1084 = vmatpush.bf16.xpose.msrb.mxu3 %v1061_v46  ;;  %1294 = vmatpush.bf16.xpose.msrb.mxu0 %v1061_v46 }
 0x31e   : > { %2368 = vmatmul.msk.bf16.vlgmr.msrb.gmra.mxu3 %vm3710_vm13, %v3735_v45  ;;  %vm1067_vm13 = vcmp.le.s32.totalorder %v3689_v31, %v3751_v48 }
 0x31f   : > { %1137 = vmatpush.bf16.xpose.msra.mxu3 %v1061_v46 }
 0x327   : > { %1223 = vmatpush.bf16.xpose.msrb.mxu3 %v1061_v46 }
 0x32e   : > { %2371 = vmatmul.msk.bf16.vlgmr.msra.gmra.mxu3 %vm2369_vm12, %v3735_v45 }
 0x32f   : > { %2385 = vmatpush.bf16.msk.msra.mxu3 %vm2380_vm2, %v3714_v40  ;;  %v3760_v40 = vadd.s32 8, %v3751_v48 }
 0x331   : > { %vm1068_vm9 = vcmp.le.s32.totalorder %v3689_v31, %v3760_v40 }
 0x33e   : > { %2382 = vmatmul.msk.bf16.vlgmr.msrb.gmra.mxu3 %vm2380_vm2, %v3735_v45 }
 0x3a1   : > { %v1086_v39 = vpop.f32.mrf.mxu3 }
 0x3a2   : > { %v1091_v55 = vmul.f32 0.12, %v1086_v39 }
 0x3a4   : > { %v1093_v57 = vsel %vm1067_vm13, %v1091_v55, -1e+30 }
 0x3a5   : > { %v1096_v58 = vsel %vm1095_vm3, %v1093_v57, -inf }
 0x3a9   : > { %v1088_v47 = vpop.f32.mrf.mxu3 }
 0x3aa   : > { %v1092_v7 = vmul.f32 0.12, %v1088_v47 }
 0x3ac   : > { %v1094_v10 = vsel %vm1068_vm9, %v1092_v7, -1e+30 }
 0x3ad   : > { %v1099_v15 = vsel %vm1095_vm3, %v1094_v10, -inf }
 0x3b1   : > { %v1139_v49 = vpop.f32.mrf.mxu3 }
 0x3b2   : > { %v1144_v50 = vmul.f32 0.12, %v1139_v49 }
 0x3b4   : > { %v1146_v37 = vsel %vm1067_vm13, %v1144_v50, -1e+30 }
 0x3b5   : > { %v1148_v51 = vsel %vm1095_vm3, %v1146_v37, -inf }
 0x3b6   : > { %1149 = vmax.xlane.f32.xlu2 %v1148_v51 }
 0x3b9   : > { %v1141_v52 = vpop.f32.mrf.mxu3 }
 0x3ba   : > { %v1145_v53 = vmul.f32 0.12, %v1141_v52 }
 0x3bc   : > { %v1147_v28 = vsel %vm1068_vm9, %v1145_v53, -1e+30 }
 0x3bd   : > { %v1151_v54 = vsel %vm1095_vm3, %v1147_v28, -inf }
 0x3be   : > { %1152 = vmax.xlane.f32.xlu2 %v1151_v54 }
 0x3c1   : > { %v1225_v56 = vpop.f32.mrf.mxu3 }
 0x3c2   : > { %v1230_v16 = vmul.f32 0.12, %v1225_v56 }
 0x3c4   : > { %v1232_v19 = vsel %vm1067_vm13, %v1230_v16, -1e+30  ;;  %v2719_v16 = vld [vmem:[#allocation8 + $0x38] sm:$0xff] }
 0x3c5   : > { %v1234_v22 = vsel %vm1095_vm3, %v1232_v19, -inf  ;;  %1415 = vmatpush.bf16.msra.mxu2 %v2719_v16 }
 0x3c6   : > { %1097 = vmax.xlane.f32.xlu2 %v1096_v58 }
 0x3c9   : > { %v1227_v59 = vpop.f32.mrf.mxu3 }
 0x3ca   : > { %v1231_v60 = vmul.f32 0.12, %v1227_v59 }
 0x3cc   : > { %v1233_v61 = vsel %vm1068_vm9, %v1231_v60, -1e+30 }
 0x3cd   : > { %v1237_v62 = vsel %vm1095_vm3, %v1233_v61, -inf }
 0x3ce   : > { %1238 = vmax.xlane.f32.xlu2 %v1237_v62 }
 0x429   : > { %v1150_v63 = vpop.xlane.xlu2 %1149 }
 0x42a   : > { %v1154_v0 = vsub.f32 %v1146_v37, %v1150_v63 }
 0x42c   : > { %v1156_v1 = vmul.f32 1.442695, %v1154_v0 }
 0x42e   : > { %2951 = vpow2.f32 %v1156_v1 }
 0x431   : > { %v1153_v2 = vpop.xlane.xlu2 %1152 }
 0x432   : > { %v1155_v3 = vsub.f32 %v1147_v28, %v1153_v2 }
 0x434   : > { %v2952_v4 = vpop.eup %2951  ;;  %v1158_v5 = vmul.f32 1.442695, %v1155_v3 }
 0x435   : > { %v1160_v6 = vsel %vm1095_vm3, %v2952_v4, 0.0 }
 0x436   : > { %2953 = vpow2.f32 %v1158_v5  ;;  %1161 = vadd.xlane.f32.xlu0 %v1160_v6 }
 0x439   : > { %v1098_v9 = vpop.xlane.xlu2 %1097 }
 0x43a   : > { %v1102_v11 = vsub.f32 %v1093_v57, %v1098_v9 }
 0x43c   : > { %v2954_v12 = vpop.eup %2953  ;;  %v1104_v13 = vmul.f32 1.442695, %v1102_v11 }
 0x43d   : > { %v1163_v14 = vsel %vm1095_vm3, %v2954_v12, 0.0 }
 0x43e   : > { %2955 = vpow2.f32 %v1104_v13  ;;  %1164 = vadd.xlane.f32.xlu1 %v1163_v14  ;;  %1100 = vmax.xlane.f32.xlu0 %v1099_v15 }
 0x441   : > { %v1239_v17 = vpop.xlane.xlu2 %1238 }
 0x442   : > { %v1241_v18 = vsub.f32 %v1233_v61, %v1239_v17  ;;  %v2718_v17 = vld [vmem:[#allocation8 + $0x30] sm:$0xff] }
 0x443   : > { %1416 = vmatpush.bf16.msra.mxu2 %v2718_v17  ;;  %v2508_v17 = vld [vmem:[#allocation10 + $0xa0] sm:$0xf] }
 0x444   : > { %v3785_v20 = vpop.eup %2955  ;;  %v1244_v21 = vmul.f32 1.442695, %v1241_v18 }
 0x445   : > { %v1108_v23 = vsel %vm1095_vm3, %v3785_v20, 0.0 }
 0x446   : > { %2957 = vpow2.f32 %v1244_v21  ;;  %1235 = vmax.xlane.f32.xlu1 %v1234_v22  ;;  %1109 = vadd.xlane.f32.xlu2 %v1108_v23 }
 0x44c   : > { %v3790_v24 = vpop.eup %2957 }
 0x44d   : > { %v1249_v25 = vsel %vm1095_vm3, %v3790_v24, 0.0 }
 0x44e   : > { %1250 = vadd.xlane.f32.xlu2 %v1249_v25  ;;  %v2715_v25 = vld [vmem:[#allocation8 + $0x18] sm:$0xff] }
 0x4a9   : > { %v1162_v26 = vpop.xlane.xlu0 %1161 }
 0x4aa   : > { %2959 = vrcp.f32 %v1162_v26  ;;  %v2714_v26 = vld [vmem:[#allocation8 + $0x10] sm:$0xff] }
 0x4b0   : > { %v2960_v29 = vpop.eup %2959 }
 0x4b1   : > { %v1165_v27 = vpop.xlane.xlu1 %1164  ;;  %v1168_v32 = vmul.f32 %v2960_v29, %v2952_v4  ;;  %v1101_v38 = vpop.xlane.xlu0 %1100  ;;  %v2712_v29 = vld [vmem:[#allocation8] sm:$0xff] }
 0x4b2   : > { %2961 = vrcp.f32 %v1165_v27  ;;  %v1103_v43 = vsub.f32 %v1094_v10, %v1101_v38  ;;  %v2713_v27 = vld [vmem:[#allocation8 + $0x8] sm:$0xff] }
 0x4b4   : > { %v1106_v33 = vmul.f32 1.442695, %v1103_v43 }
 0x4b6   : > { %2963 = vpow2.f32 %v1106_v33 }
 0x4b8   : > { %v2962_v30 = vpop.eup %2961 }
 0x4b9   : > { %v1169_v34 = vmul.f32 %v2962_v30, %v2954_v12  ;;  %v1236_v44 = vpop.xlane.xlu1 %1235  ;;  %v1110_v57 = vpop.xlane.xlu2 %1109 }
 0x4ba   : > { %v1240_v47 = vsub.f32 %v1232_v19, %v1236_v44  ;;  %v2717_v19 = vld [vmem:[#allocation8 + $0x28] sm:$0xff] }
 0x4bb   : > { %v1173_v35 = vpack.c.bf16 %v1169_v34, %v1168_v32  ;;  %1417 = vmatpush.bf16.msra.mxu2 %v2717_v19  ;;  %v2740_v19 = vld [vmem:[#allocation10 + $0xa4] sm:$0xf] }
 0x4bc   : > { %v1242_v41 = vmul.f32 1.442695, %v1240_v47  ;;  %v2964_v37 = vpop.eup %2963 }
 0x4bd   : > { %2375 = vmatmul.msk.bf16.vlgmr.msra.gmra.mxu0 %vm1095_vm3, %v1173_v35  ;;  %v1111_v28 = vsel %vm1095_vm3, %v2964_v37, 0.0 }
 0x4be   : > { %2965 = vpow2.f32 %v1242_v41 }
 0x4c1   : > { %v1251_v62 = vpop.xlane.xlu2 %1250 }
 0x4c4   : > { %v2966_v48 = vpop.eup %2965 }
 0x4c5   : > { %v1246_v54 = vsel %vm1095_vm3, %v2966_v48, 0.0 }
 0x4cd   : > { %2389 = vmatmul.msk.bf16.vlgmr.msrb.gmra.mxu0 %vm3716_vm14, %v3735_v45 }
 0x53a   : > { %v3798_v36 = vpop.f32.mrf.mxu0 }
 0x542   : > { %v3800_v42 = vpop.f32.mrf.mxu0 }
 0x54a   : > { %v1296_v46 = vpop.f32.mrf.mxu0 }
 0x54b   : > { %v1301_v39 = vmul.f32 0.12, %v1296_v46 }
 0x54d   : > { %v1303_v49 = vsel %vm1067_vm13, %v1301_v39, -1e+30 }
 0x54e   : > { %v1305_v50 = vsel %vm1095_vm3, %v1303_v49, -inf }
 0x54f   : > { %1306 = vmax.xlane.f32.xlu0 %v1305_v50 }
 0x552   : > { %v1298_v45 = vpop.f32.mrf.mxu0 }
 0x553   : > { %v1302_v51 = vmul.f32 0.12, %v1298_v45  ;;  %v2987_v45 = vld [vmem:[%s3625_s14] sm:$0xff] }
 0x555   : > { %v1304_v52 = vsel %vm1068_vm9, %v1302_v51, -1e+30 }
 0x556   : > { %v1308_v53 = vsel %vm1095_vm3, %v1304_v52, -inf }
 0x557   : > { %1309 = vmax.xlane.f32.xlu1 %v1308_v53  ;;  %1112 = vadd.xlane.f32.xlu0 %v1111_v28 }
 0x55f   : > { %1247 = vadd.xlane.f32.xlu1 %v1246_v54 }
 0x5c2   : > { %v1307_v55 = vpop.xlane.xlu0 %1306 }
 0x5c3   : > { %v1311_v56 = vsub.f32 %v1303_v49, %v1307_v55 }
 0x5c5   : > { %v1313_v58 = vmul.f32 1.442695, %v1311_v56 }
 0x5c7   : > { %2967 = vpow2.f32 %v1313_v58  ;;  %v2540_v58 = vld [vmem:[#allocation10 + $0xe0] sm:$0xf] }
 0x5c8   : > { %2969 = vrcp.f32 %v1110_v57 }
 0x5ca   : > { %v1310_v59 = vpop.xlane.xlu1 %1309  ;;  %v1113_v60 = vpop.xlane.xlu0 %1112 }
 0x5cb   : > { %v1312_v31 = vsub.f32 %v1304_v52, %v1310_v59  ;;  %2971 = vrcp.f32 %v1113_v60  ;;  %v2988_v52 = vld [vmem:[%s3625_s14 + $0x8] sm:$0xff]  ;;  %v2750_v59 = vld [vmem:[#allocation10 + $0xec] sm:$0xf0]  ;;  %s607_s14 = scalar_lea.vmem [#allocation19], %s2259_s7 }
 0x5cc   : > { %v2748_v60 = vld [vmem:[#allocation10 + $0xe4] sm:$0xf]  ;;  %s2081_s16 = sshll.u32 %s607_s14, 4  ;;  %s2082_s16 = int_to_ptr.vmem [resolvable:$true] %s2081_s16 }
 0x5cd   : > { %v2968_v40 = vpop.eup %2967  ;;  %v1315_v61 = vmul.f32 1.442695, %v1312_v31  ;;  %v2541_v31 = vor.u32 %v2750_v59, %v2540_v58  ;;  %v2460_v59 = vld [vmem:[#allocation10 + $0x40] sm:$0xf] }
 0x5ce   : > { %v1317_v63 = vsel %vm1095_vm3, %v2968_v40, 0.0  ;;  %v2970_v0 = vpop.eup %2969 }
 0x5cf   : > { %2973 = vpow2.f32 %v1315_v61  ;;  %1318 = vadd.xlane.f32.xlu0 %v1317_v63  ;;  %v1116_v2 = vmul.f32 %v2970_v0, %v3785_v20  ;;  %v2548_v61 = vld [vmem:[#allocation10 + $0xe8] sm:$0xf]  ;;  %1676 = vmatpush.bf16.msrb.mxu3 %v2541_v31  ;;  %v2728_v31 = vld [vmem:[#allocation10 + $0x44] sm:$0xf] }
 0x5d0   : > { %2975 = vrcp.f32 %v1251_v62  ;;  %v2751_v62 = vld [vmem:[#allocation10 + $0xf4] sm:$0xf0] }
 0x5d1   : > { %v2972_v1 = vpop.eup %2971  ;;  %v2549_v0 = vor.u32 %v2751_v62, %v2548_v61  ;;  %v2462_v61 = vld [vmem:[#allocation10 + $0x50] sm:$0xf0]  ;;  %v2468_v62 = vld [vmem:[#allocation10 + $0x48] sm:$0xf] }
 0x5d2   : > { %v1117_v3 = vmul.f32 %v2972_v1, %v2964_v37  ;;  %v1248_v4 = vpop.xlane.xlu1 %1247  ;;  %v2749_v1 = vld [vmem:[#allocation10 + $0xec] sm:$0xf] }
 0x5d3   : > { %2977 = vrcp.f32 %v1248_v4  ;;  %v2524_v4 = vld [vmem:[#allocation10 + $0xc0] sm:$0xf] }
 0x5d4   : > { %v1121_v5 = vpack.c.bf16 %v1117_v3, %v1116_v2  ;;  %v2550_v2 = vld [vmem:[#allocation10 + $0xf8] sm:$0xf0] }
 0x5d5   : > { %v2974_v6 = vpop.eup %2973  ;;  %v2553_v3 = vor.u32 %v2749_v1, %v2550_v2  ;;  %v2729_v2 = vld [vmem:[#allocation10 + $0x4c] sm:$0xf] }
 0x5d6   : > { %2379 = vmatmul.msk.bf16.vlgmr.msra.gmra.mxu1 %vm1095_vm3, %v1121_v5  ;;  %v1320_v7 = vsel %vm1095_vm3, %v2974_v6, 0.0  ;;  %v2976_v9 = vpop.eup %2975  ;;  %v2746_v5 = vld [vmem:[#allocation10 + $0xcc] sm:$0xf0] }
 0x5d7   : > { %1321 = vadd.xlane.f32.xlu1 %v1320_v7  ;;  %v1255_v10 = vmul.f32 %v2976_v9, %v3790_v24  ;;  %v2716_v24 = vld [vmem:[#allocation8 + $0x20] sm:$0xff]  ;;  %1704 = vmatpush.bf16.msra.mxu1 %v2549_v0  ;;  %v2525_v7 = vor.u32 %v2746_v5, %v2524_v4  ;;  %v2526_v9 = vld [vmem:[#allocation10 + $0xd0] sm:$0xf0]  ;;  %v2465_v0 = vor.u32 %v2728_v31, %v2462_v61 }
 0x5d8   : > { %1418 = vmatpush.bf16.msra.mxu2 %v2716_v24  ;;  %v2444_v5 = vld [vmem:[#allocation10 + $0x20] sm:$0xf] }
 0x5d9   : > { %v2978_v11 = vpop.eup %2977  ;;  %1677 = vmatpush.bf16.msrb.mxu3 %v2525_v7  ;;  %v2724_v7 = vld [vmem:[#allocation10 + $0x24] sm:$0xf] }
 0x5da   : > { %v1254_v12 = vmul.f32 %v2978_v11, %v2966_v48  ;;  %v2532_v11 = vld [vmem:[#allocation10 + $0xc8] sm:$0xf] }
 0x5dc   : > { %v1259_v13 = vpack.c.bf16 %v1255_v10, %v1254_v12  ;;  %1419 = vmatpush.bf16.msra.mxu2 %v2715_v25  ;;  %v2747_v10 = vld [vmem:[#allocation10 + $0xd4] sm:$0xf0] }
 0x5de   : > { %2386 = vmatmul.msk.bf16.vlgmr.msra.gmra.mxu3 %vm1095_vm3, %v1259_v13  ;;  %v2533_v13 = vor.u32 %v2747_v10, %v2532_v11  ;;  %v2446_v11 = vld [vmem:[#allocation10 + $0x30] sm:$0xf0]  ;;  %v2452_v10 = vld [vmem:[#allocation10 + $0x28] sm:$0xf] }
 0x5e0   : > { %1420 = vmatpush.bf16.msra.mxu2 %v2714_v26  ;;  %1705 = vmatpush.bf16.msra.mxu1 %v2533_v13  ;;  %v2741_v26 = vld [vmem:[#allocation10 + $0xac] sm:$0xf] }
 0x5e4   : > { %1421 = vmatpush.bf16.msra.mxu2 %v2713_v27  ;;  %v2518_v27 = vld [vmem:[#allocation10 + $0xb8] sm:$0xf0] }
 0x5e8   : > { %1422 = vmatpush.bf16.msra.mxu2 %v2712_v29  ;;  %v2521_v29 = vor.u32 %v2741_v26, %v2518_v27  ;;  %v2436_v26 = vld [vmem:[#allocation10 + $0x8] sm:$0xf]  ;;  %v2723_v27 = vld [vmem:[#allocation10 + $0x14] sm:$0xf0] }
 0x5ec   : > { %1718 = vmatpush.bf16.msrb.mxu2 %v2553_v3  ;;  %v2470_v3 = vld [vmem:[#allocation10 + $0x58] sm:$0xf0] }
 0x5ed   : > { %v2473_v4 = vor.u32 %v2729_v2, %v2470_v3  ;;  %v2935_v2 = vld [vmem:[%s3893_s5] ss:$0 sm:$0xff] }
 0x642   : > { %v1319_v14 = vpop.xlane.xlu0 %1318 }
 0x643   : > { %2979 = vrcp.f32 %v1319_v14  ;;  %v2745_v14 = vld [vmem:[#allocation10 + $0xcc] sm:$0xf] }
 0x649   : > { %v2980_v18 = vpop.eup %2979 }
 0x64a   : > { %v1322_v15 = vpop.xlane.xlu1 %1321  ;;  %v1325_v21 = vmul.f32 %v2980_v18, %v2968_v40  ;;  %v2542_v40 = vld [vmem:[#allocation10 + $0xf0] sm:$0xf0]  ;;  %v2742_v18 = vld [vmem:[#allocation10 + $0xac] sm:$0xf0] }
 0x64b   : > { %2981 = vrcp.f32 %v1322_v15  ;;  %v2545_v63 = vor.u32 %v2748_v60, %v2542_v40  ;;  %v2534_v15 = vld [vmem:[#allocation10 + $0xd8] sm:$0xf0]  ;;  %v2730_v60 = vld [vmem:[#allocation10 + $0x4c] sm:$0xf0] }
 0x64c   : > { %v2537_v16 = vor.u32 %v2745_v14, %v2534_v15  ;;  %v2461_v40 = vor.u32 %v2730_v60, %v2460_v59  ;;  %v2449_v14 = vor.u32 %v2724_v7, %v2446_v11  ;;  %v2772_v59 = vld [vmem:[#allocation11 + $0xa0] sm:$0xff]  ;;  %v2936_v7 = vld [vmem:[%s3931_s8] ss:$0 sm:$0xff] }
 0x64d   : > { %1690 = vmatpush.bf16.msra.mxu0 %v2545_v63  ;;  %v2731_v63 = vld [vmem:[#allocation10 + $0x54] sm:$0xf0] }
 0x64e   : > { %1719 = vmatpush.bf16.msrb.mxu2 %v2537_v16  ;;  %v2469_v1 = vor.u32 %v2731_v63, %v2468_v62  ;;  %v2725_v16 = vld [vmem:[#allocation10 + $0x2c] sm:$0xf] }
 0x651   : > { %v2982_v20 = vpop.eup %2981 }
 0x652   : > { %v1326_v22 = vmul.f32 %v2982_v20, %v2974_v6  ;;  %v2744_v6 = vld [vmem:[#allocation10 + $0xc4] sm:$0xf]  ;;  %v2509_v20 = vor.u32 %v2742_v18, %v2508_v17  ;;  %1720 = vmatpush.bf16.msrb.mxu2 %v2521_v29  ;;  %v2454_v17 = vld [vmem:[#allocation10 + $0x38] sm:$0xf0]  ;;  %v2428_v18 = vld [vmem:[#allocation10] sm:$0xf] }
 0x653   : > { %v1203_v30 = vpop.f32.mrf.mxu1  ;;  %v2529_v12 = vor.u32 %v2744_v6, %v2526_v9  ;;  %v2726_v6 = vld [vmem:[#allocation10 + $0x2c] sm:$0xf0]  ;;  %v2721_v29 = vld [vmem:[#allocation10 + $0xc] sm:$0xf] }
 0x654   : > { %v1330_v23 = vpack.c.bf16 %v1326_v22, %v1325_v21  ;;  %v1204_v43 = vadd.f32 %v1203_v30, %v3798_v36  ;;  %v2510_v21 = vld [vmem:[#allocation10 + $0xb0] sm:$0xf0]  ;;  %v2516_v22 = vld [vmem:[#allocation10 + $0xa8] sm:$0xf]  ;;  %1678 = vmatpush.bf16.msrb.mxu3 %v2509_v20  ;;  %v2492_v30 = vld [vmem:[#allocation10 + $0x80] sm:$0xf]  ;;  %v2445_v9 = vor.u32 %v2726_v6, %v2444_v5  ;;  %v2457_v20 = vor.u32 %v2725_v16, %v2454_v17 }
 0x655   : > { %1691 = vmatpush.bf16.msra.mxu0 %v2529_v12  ;;  %v2513_v24 = vor.u32 %v2740_v19, %v2510_v21  ;;  %v2727_v12 = vld [vmem:[#allocation10 + $0x34] sm:$0xf0]  ;;  %v2722_v21 = vld [vmem:[#allocation10 + $0xc] sm:$0xf0] }
 0x656   : > { %2393 = vmatmul.msk.bf16.vlgmr.msrb.gmra.mxu1 %vm1095_vm3, %v1330_v23  ;;  %v2743_v23 = vld [vmem:[#allocation10 + $0xb4] sm:$0xf0]  ;;  %v2453_v15 = vor.u32 %v2727_v12, %v2452_v10  ;;  %v2770_v16 = vld [vmem:[#allocation11 + $0x90] sm:$0xff] }
 0x657   : > { %v2517_v25 = vor.u32 %v2743_v23, %v2516_v22  ;;  %v2720_v22 = vld [vmem:[#allocation10 + $0x4] sm:$0xf]  ;;  %v2430_v23 = vld [vmem:[#allocation10 + $0x10] sm:$0xf0]  ;;  %v2755_v17 = vld [vmem:[#allocation11 + $0x18] sm:$0xff] }
 0x659   : > { %1692 = vmatpush.bf16.msra.mxu0 %v2513_v24  ;;  %1706 = vmatpush.bf16.msra.mxu1 %v2517_v25  ;;  %v2429_v24 = vor.u32 %v2722_v21, %v2428_v18  ;;  %v2433_v25 = vor.u32 %v2720_v22, %v2430_v23  ;;  %v2779_v18 = vld [vmem:[#allocation11 + $0xd8] sm:$0xff]  ;;  %v2754_v21 = vld [vmem:[#allocation11 + $0x10] sm:$0xff]  ;;  %v2760_v23 = vld [vmem:[#allocation11 + $0x40] sm:$0xff] }
 0x65a   : > { %v2778_v22 = vld [vmem:[#allocation11 + $0xd0] sm:$0xff] }
 0x65b   : > { %v1205_v32 = vpop.f32.mrf.mxu1 }
 0x65c   : > { %v1206_v33 = vadd.f32 %v1205_v32, %v3800_v42  ;;  %v2738_v32 = vld [vmem:[#allocation10 + $0x8c] sm:$0xf0] }
 0x661   : > { %v1272_v34 = vpop.f32.mrf.mxu3 }
 0x662   : > { %v1277_v44 = vadd.f32 %v1272_v34, %v1204_v43  ;;  %v2736_v34 = vld [vmem:[#allocation10 + $0x84] sm:$0xf]  ;;  %v2500_v43 = vld [vmem:[#allocation10 + $0x88] sm:$0xf] }
 0x669   : > { %v1274_v38 = vpop.f32.mrf.mxu3 }
 0x66a   : > { %v1278_v46 = vadd.f32 %v1274_v38, %v1206_v33  ;;  %v2494_v38 = vld [vmem:[#allocation10 + $0x90] sm:$0xf0]  ;;  %v2739_v33 = vld [vmem:[#allocation10 + $0x94] sm:$0xf0] }
 0x6d3   : > { %v1343_v35 = vpop.f32.mrf.mxu1 }
 0x6d4   : > { %v1348_v47 = vadd.f32 %v1343_v35, %v1277_v44  ;;  %v2493_v35 = vor.u32 %v2738_v32, %v2492_v30  ;;  %v2497_v44 = vor.u32 %v2736_v34, %v2494_v38  ;;  %v2437_v32 = vor.u32 %v2723_v27, %v2436_v26  ;;  %v2438_v34 = vld [vmem:[#allocation10 + $0x18] sm:$0xf0]  ;;  %v2777_v26 = vld [vmem:[#allocation11 + $0xc8] sm:$0xff]  ;;  %v2752_v27 = vld [vmem:[#allocation11] sm:$0xff] }
 0x6d6   : > { %1679 = vmatpush.bf16.msrb.mxu3 %v2493_v35  ;;  %1693 = vmatpush.bf16.msra.mxu0 %v2497_v44  ;;  %v2441_v35 = vor.u32 %v2721_v29, %v2438_v34  ;;  %v2776_v29 = vld [vmem:[#allocation11 + $0xc0] sm:$0xff] }
 0x6db   : > { %v1345_v39 = vpop.f32.mrf.mxu1 }
 0x6dc   : > { %v1349_v49 = vadd.f32 %v1345_v39, %v1278_v46  ;;  %v2501_v46 = vor.u32 %v2739_v33, %v2500_v43  ;;  %v2737_v39 = vld [vmem:[#allocation10 + $0x8c] sm:$0xf]  ;;  %v2767_v43 = vld [vmem:[#allocation11 + $0x78] sm:$0xff] }
 0x6dd   : > { %v2775_v33 = vld [vmem:[#allocation11 + $0xb8] sm:$0xff] }
 0x6de   : > { %v1350_v50 = vpack.c.bf16 %v1349_v49, %v1348_v47  ;;  %v2502_v47 = vld [vmem:[#allocation10 + $0x98] sm:$0xf0]  ;;  %1707 = vmatpush.bf16.msra.mxu1 %v2501_v46 }
 0x6df   : > { %v2505_v49 = vor.u32 %v2737_v39, %v2502_v47  ;;  %v2759_v46 = vld [vmem:[#allocation11 + $0x38] sm:$0xff]  ;;  %v2766_v47 = vld [vmem:[#allocation11 + $0x70] sm:$0xff] }
 0x6e0   : > { %1423 = vmatmul.bf16.vlgmr.msra.gmra.mxu2 %v1350_v50  ;;  %v2476_v50 = vld [vmem:[#allocation10 + $0x60] sm:$0xf]  ;;  %v2783_v39 = vld [vmem:[#allocation11 + $0xf8] sm:$0xff] }
 0x6e1   : > { %1721 = vmatpush.bf16.msrb.mxu2 %v2505_v49  ;;  %v2774_v49 = vld [vmem:[#allocation11 + $0xb0] sm:$0xff] }
 0x763   : > { %v1424_v41 = vpop.f32.mrf.mxu2 }
 0x764   : > { %v3822_v37 = vadd.f32 %v2987_v45, %v1424_v41  ;;  %v2734_v41 = vld [vmem:[#allocation10 + $0x6c] sm:$0xf0]  ;;  %v2732_v45 = vld [vmem:[#allocation10 + $0x64] sm:$0xf] }
 0x766   : > { %1431 = vadd.xlane.f32.xlu2 %v3822_v37 }
 0x76b   : > { %v1426_v51 = vpop.f32.mrf.mxu2 }
 0x76c   : > { %v3826_v53 = vadd.f32 %v2988_v52, %v1426_v51  ;;  %v2477_v51 = vor.u32 %v2734_v41, %v2476_v50  ;;  %v2478_v52 = vld [vmem:[#allocation10 + $0x70] sm:$0xf0] }
 0x76e   : > { %1433 = vadd.xlane.f32.xlu0 %v3826_v53  ;;  %1680 = vmatpush.bf16.msrb.mxu3 %v2477_v51  ;;  %v2782_v51 = vld [vmem:[#allocation11 + $0xf0] sm:$0xff] }
 0x772   : > { %1681 = vmatpush.bf16.msrb.mxu3 %v2461_v40 }
 0x776   : > { %1682 = vmatpush.bf16.msrb.mxu3 %v2445_v9 }
 0x77a   : > { %1683 = vmatpush.bf16.msrb.mxu3 %v2429_v24  ;;  %v2768_v24 = vld [vmem:[#allocation11 + $0x80] sm:$0xff] }
 0x77e   : > { %2008 = vmatpush.bf16.msra.mxu3 %v2759_v46 }
 0x7d9   : > { %v1432_v36 = vpop.xlane.xlu2 %1431 }
 0x7da   : > { %v1435_v42 = vmul.f32 %v1432_v36, %v3653_v8  ;;  %v2484_v36 = vld [vmem:[#allocation10 + $0x68] sm:$0xf] }
 0x7dc   : > { %v3831_v28 = vsub.f32 %v3822_v37, %v1435_v42  ;;  %v2735_v42 = vld [vmem:[#allocation10 + $0x74] sm:$0xf0] }
 0x7de   : > { %v1439_v48 = vmul.f32 %v3831_v28, %v3831_v28 }
 0x7e0   : > { %1441 = vadd.xlane.f32.xlu1 %v1439_v48  ;;  %v2481_v48 = vor.u32 %v2732_v45, %v2478_v52  ;;  %v2758_v45 = vld [vmem:[#allocation11 + $0x30] sm:$0xff] }
 0x7e1   : > { %v1434_v54 = vpop.xlane.xlu0 %1433  ;;  %2009 = vmatpush.bf16.msra.mxu3 %v2758_v45 }
 0x7e2   : > { %v1436_v55 = vmul.f32 %v1434_v54, %v3653_v8  ;;  %v2485_v54 = vor.u32 %v2735_v42, %v2484_v36  ;;  %1694 = vmatpush.bf16.msra.mxu0 %v2481_v48  ;;  %v2765_v42 = vld [vmem:[#allocation11 + $0x68] sm:$0xff] }
 0x7e3   : > { %v2773_v48 = vld [vmem:[#allocation11 + $0xa8] sm:$0xff] }
 0x7e4   : > { %v3837_v56 = vsub.f32 %v3826_v53, %v1436_v55  ;;  %v2733_v55 = vld [vmem:[#allocation10 + $0x6c] sm:$0xf]  ;;  %1708 = vmatpush.bf16.msra.mxu1 %v2485_v54 }
 0x7e5   : > { %v2781_v54 = vld [vmem:[#allocation11 + $0xe8] sm:$0xff] }
 0x7e6   : > { %v1440_v57 = vmul.f32 %v3837_v56, %v3837_v56  ;;  %1695 = vmatpush.bf16.msra.mxu0 %v2465_v0 }
 0x7e8   : > { %1443 = vadd.xlane.f32.xlu2 %v1440_v57  ;;  %v2486_v57 = vld [vmem:[#allocation10 + $0x78] sm:$0xf0]  ;;  %1709 = vmatpush.bf16.msra.mxu1 %v2469_v1 }
 0x7e9   : > { %v2489_v58 = vor.u32 %v2733_v55, %v2486_v57 }
 0x7ea   : > { %1696 = vmatpush.bf16.msra.mxu0 %v2449_v14  ;;  %v2756_v14 = vld [vmem:[#allocation11 + $0x20] sm:$0xff] }
 0x7eb   : > { %1722 = vmatpush.bf16.msrb.mxu2 %v2489_v58  ;;  %v2764_v58 = vld [vmem:[#allocation11 + $0x60] sm:$0xff] }
 0x7ec   : > { %1710 = vmatpush.bf16.msra.mxu1 %v2453_v15  ;;  %v2780_v15 = vld [vmem:[#allocation11 + $0xe0] sm:$0xff] }
 0x7ee   : > { %1697 = vmatpush.bf16.msra.mxu0 %v2433_v25  ;;  %v2753_v25 = vld [vmem:[#allocation11 + $0x8] sm:$0xff] }
 0x7ef   : > { %1723 = vmatpush.bf16.msrb.mxu2 %v2473_v4 }
 0x7f0   : > { %1711 = vmatpush.bf16.msra.mxu1 %v2437_v32 }
 0x7f2   : > { %2022 = vmatpush.bf16.msrb.mxu0 %v2767_v43 }
 0x7f3   : > { %1724 = vmatpush.bf16.msrb.mxu2 %v2457_v20  ;;  %v2769_v20 = vld [vmem:[#allocation11 + $0x88] sm:$0xff] }
 0x7f4   : > { %2036 = vmatpush.bf16.msrb.mxu1 %v2775_v33 }
 0x7f6   : > { %2023 = vmatpush.bf16.msrb.mxu0 %v2766_v47 }
 0x7f7   : > { %1725 = vmatpush.bf16.msrb.mxu2 %v2441_v35 }
 0x7f8   : > { %2037 = vmatpush.bf16.msrb.mxu1 %v2774_v49 }
 0x7fa   : > { %2024 = vmatpush.bf16.msrb.mxu0 %v2765_v42 }
 0x7fb   : > { %2050 = vmatpush.bf16.msra.mxu2 %v2783_v39 }
 0x7fc   : > { %2038 = vmatpush.bf16.msrb.mxu1 %v2773_v48 }
 0x7fe   : > { %2025 = vmatpush.bf16.msrb.mxu0 %v2764_v58 }
 0x7ff   : > { %2051 = vmatpush.bf16.msra.mxu2 %v2782_v51 }
 0x800   : > { %2039 = vmatpush.bf16.msrb.mxu1 %v2772_v59 }
 0x803   : > { %2052 = vmatpush.bf16.msra.mxu2 %v2781_v54 }
 0x807   : > { %2053 = vmatpush.bf16.msra.mxu2 %v2780_v15 }
 0x80b   : > { %2054 = vmatpush.bf16.msra.mxu2 %v2779_v18 }
 0x80f   : > { %2055 = vmatpush.bf16.msra.mxu2 %v2778_v22 }
 0x813   : > { %2056 = vmatpush.bf16.msra.mxu2 %v2777_v26 }
 0x817   : > { %2057 = vmatpush.bf16.msra.mxu2 %v2776_v29 }
 0x853   : > { %v1442_v13 = vpop.xlane.xlu1 %1441 }
 0x854   : > { %v1445_v19 = vmul.f32 %v1442_v13, %v3653_v8  ;;  %v2771_v13 = vld [vmem:[#allocation11 + $0x98] sm:$0xff] }
 0x855   : > { %2040 = vmatpush.bf16.msrb.mxu1 %v2771_v13 }
 0x856   : > { %v1447_v30 = vadd.f32 1e-05, %v1445_v19  ;;  %v2761_v19 = vld [vmem:[#allocation11 + $0x48] sm:$0xff] }
 0x858   : > { %2983 = vrsqrt.f32 %v1447_v30  ;;  %vm1455_vm14 = vweird.f32 %v1447_v30 }
 0x859   : > { %2041 = vmatpush.bf16.msrb.mxu1 %v2770_v16 }
 0x85b   : > { %v1444_v38 = vpop.xlane.xlu2 %1443 }
 0x85c   : > { %v1446_v44 = vmul.f32 %v1444_v38, %v3653_v8  ;;  %v2757_v8 = vld [vmem:[#allocation11 + $0x28] sm:$0xff] }
 0x85d   : > { %2010 = vmatpush.bf16.msra.mxu3 %v2757_v8  ;;  %2042 = vmatpush.bf16.msrb.mxu1 %v2769_v20 }
 0x85e   : > { %v2984_v50 = vpop.eup %2983  ;;  %v1448_v41 = vadd.f32 1e-05, %v1446_v44 }
 0x85f   : > { %v1450_v52 = vmul.f32 %v2984_v50, %v1447_v30  ;;  %vm1456_vm12 = vweird.f32 %v2984_v50 }
 0x860   : > { %2985 = vrsqrt.f32 %v1448_v41  ;;  %vm1457_vm4 = vmor %vm1455_vm14, %vm1456_vm12  ;;  %vm1465_vm6 = vweird.f32 %v1448_v41 }
 0x861   : > { %v1451_v36 = vmul.f32 %v2984_v50, %v1450_v52  ;;  %2011 = vmatpush.bf16.msra.mxu3 %v2756_v14  ;;  %2043 = vmatpush.bf16.msrb.mxu1 %v2768_v24 }
 0x863   : > { %v1452_v55 = vmul.f32 0.5, %v1451_v36 }
 0x865   : > { %v1453_v57 = vsub.f32 1.5, %v1452_v55  ;;  %2012 = vmatpush.bf16.msra.mxu3 %v2755_v17 }
 0x866   : > { %v2986_v60 = vpop.eup %2985 }
 0x867   : > { %v1454_v31 = vmul.f32 %v2984_v50, %v1453_v57  ;;  %v1460_v40 = vmul.f32 %v2986_v60, %v1448_v41  ;;  %vm1466_vm5 = vweird.f32 %v2986_v60 }
 0x868   : > { %vm1467_vm7 = vmor %vm1465_vm6, %vm1466_vm5 }
 0x869   : > { %v1461_v61 = vmul.f32 %v2986_v60, %v1460_v40  ;;  %v1458_v62 = vsel %vm1457_vm4, %v2984_v50, %v1454_v31  ;;  %2013 = vmatpush.bf16.msra.mxu3 %v2754_v21 }
 0x86a   : > { %v1469_v1 = vmul.f32 %v1458_v62, %v3831_v28  ;;  %v2763_v28 = vld [vmem:[#allocation11 + $0x58] sm:$0xff] }
 0x86b   : > { %v1462_v63 = vmul.f32 0.5, %v1461_v61  ;;  %2026 = vmatpush.bf16.msrb.mxu0 %v2763_v28 }
 0x86c   : > { %v1475_v6 = vmul.f32 %v2935_v2, %v1469_v1 }
 0x86d   : > { %v1463_v0 = vsub.f32 1.5, %v1462_v63  ;;  %2014 = vmatpush.bf16.msra.mxu3 %v2753_v25 }
 0x86e   : > { %v1481_v11 = vadd.f32 %v2936_v7, %v1475_v6 }
 0x86f   : > { %v1464_v3 = vmul.f32 %v2986_v60, %v1463_v0 }
 0x871   : > { %v1468_v4 = vsel %vm1467_vm7, %v2986_v60, %v1464_v3  ;;  %2015 = vmatpush.bf16.msra.mxu3 %v2752_v27 }
 0x872   : > { %v1470_v5 = vmul.f32 %v1468_v4, %v3837_v56  ;;  %v2762_v56 = vld [vmem:[#allocation11 + $0x50] sm:$0xff] }
 0x873   : > { %2027 = vmatpush.bf16.msrb.mxu0 %v2762_v56 }
 0x874   : > { %v1476_v9 = vmul.f32 %v2935_v2, %v1470_v5 }
 0x876   : > { %v1482_v10 = vadd.f32 %v2936_v7, %v1476_v9 }
 0x877   : > { %2028 = vmatpush.bf16.msrb.mxu0 %v2761_v19 }
 0x878   : > { %v1483_v12 = vpack.c.bf16 %v1482_v10, %v1481_v11 }
 0x87a   : > { %1684 = vmatmul.bf16.vlgmr.msrb.gmra.mxu3 %v1483_v12  ;;  %1698 = vmatmul.bf16.vlgmr.msra.gmra.mxu0 %v1483_v12 }
 0x87b   : > { %1712 = vmatmul.bf16.vlgmr.msra.gmra.mxu1 %v1483_v12  ;;  %1726 = vmatmul.bf16.vlgmr.msrb.gmra.mxu2 %v1483_v12 }
 0x87c   : > { %2029 = vmatpush.bf16.msrb.mxu0 %v2760_v23 }
 0x8f7   : > { %v1699_v30 = vpop.f32.mrf.mxu0 }
 0x8f8   : > { %v1713_v32 = vpop.f32.mrf.mxu1  ;;  %v1733_v35 = vmax.f32 %v1699_v30, 0.0 }
 0x8f9   : > { %v1734_v43 = vmax.f32 %v1713_v32, 0.0 }
 0x8fa   : > { %v1741_v47 = vmul.f32 %v1733_v35, %v1733_v35 }
 0x8fb   : > { %v1742_v50 = vmul.f32 %v1734_v43, %v1734_v43 }
 0x8fd   : > { %v1685_v34 = vpop.f32.mrf.mxu3 }
 0x8fe   : > { %v1727_v38 = vpop.f32.mrf.mxu2  ;;  %v1732_v45 = vmax.f32 %v1685_v34, 0.0 }
 0x8ff   : > { %v1701_v33 = vpop.f32.mrf.mxu0  ;;  %v1735_v52 = vmax.f32 %v1727_v38, 0.0 }
 0x900   : > { %v1737_v44 = vmax.f32 %v1701_v33, 0.0  ;;  %v1715_v46 = vpop.f32.mrf.mxu1  ;;  %v1740_v55 = vmul.f32 %v1732_v45, %v1732_v45 }
 0x901   : > { %v1738_v39 = vmax.f32 %v1715_v46, 0.0  ;;  %v1743_v58 = vmul.f32 %v1735_v52, %v1735_v52 }
 0x902   : > { %v1745_v49 = vmul.f32 %v1737_v44, %v1737_v44 }
 0x903   : > { %v1746_v41 = vmul.f32 %v1738_v39, %v1738_v39 }
 0x904   : > { %v1749_v51 = vpack.c.bf16 %v1745_v49, %v1741_v47 }
 0x905   : > { %v1750_v36 = vpack.c.bf16 %v1746_v41, %v1742_v50  ;;  %v1687_v42 = vpop.f32.mrf.mxu3 }
 0x906   : > { %v1736_v48 = vmax.f32 %v1687_v42, 0.0  ;;  %v1729_v8 = vpop.f32.mrf.mxu2  ;;  %2030 = vmatmul.bf16.vlgmr.msrb.gmra.mxu0 %v1749_v51 }
 0x907   : > { %v1739_v54 = vmax.f32 %v1729_v8, 0.0  ;;  %2044 = vmatmul.bf16.vlgmr.msrb.gmra.mxu1 %v1750_v36 }
 0x908   : > { %v1744_v57 = vmul.f32 %v1736_v48, %v1736_v48 }
 0x909   : > { %v1747_v59 = vmul.f32 %v1739_v54, %v1739_v54 }
 0x90a   : > { %v1748_v60 = vpack.c.bf16 %v1744_v57, %v1740_v55 }
 0x90b   : > { %v1751_v31 = vpack.c.bf16 %v1747_v59, %v1743_v58 }
 0x90c   : > { %2016 = vmatmul.bf16.vlgmr.msra.gmra.mxu3 %v1748_v60 }
 0x90d   : > { %2058 = vmatmul.bf16.vlgmr.msra.gmra.mxu2 %v1751_v31 }
 0x983   : > { %v2031_v40 = vpop.f32.mrf.mxu0 }
 0x984   : > { %v2045_v61 = vpop.f32.mrf.mxu1 }
 0x98b   : > { %v2033_v4 = vpop.f32.mrf.mxu0 }
 0x98c   : > { %v2047_v7 = vpop.f32.mrf.mxu1 }
 0x98f   : > { %v2017_v62 = vpop.f32.mrf.mxu3 }
 0x990   : > { %v2032_v63 = vadd.f32 %v2031_v40, %v2017_v62  ;;  %v2059_v0 = vpop.f32.mrf.mxu2 }
 0x992   : > { %v2046_v1 = vadd.f32 %v2045_v61, %v2032_v63 }
 0x994   : > { %v2060_v2 = vadd.f32 %v2059_v0, %v2046_v1 }
 0x996   : > { %v2064_v3 = vadd.f32 %v2060_v2, %v3822_v37 }
 0x997   : > { %v2019_v5 = vpop.f32.mrf.mxu3 }
 0x998   : > { %2066 = vst [vmem:[%s607_s14] sm:$0xff] %v2064_v3  ;;  %v2034_v6 = vadd.f32 %v2033_v4, %v2019_v5  ;;  %v2061_v11 = vpop.f32.mrf.mxu2 }
 0x99a   : > { %v2048_v9 = vadd.f32 %v2047_v7, %v2034_v6 }
 0x99c   : > { %v2062_v10 = vadd.f32 %v2061_v11, %v2048_v9 }
 0x99e   : > { %v2065_v37 = vadd.f32 %v2062_v10, %v3826_v53 }
 0x9a0   : > { %2067 = vst [vmem:[%s607_s14 + $0x8] sm:$0xff] %v2065_v37 }
 0x9a1   : > { %3316 = shalt.err (!%p3313_p9)
}
 0x9a2   : > { %s3395_s20 = smov 128   ;;  %s3396_s24 = smov 8  }
 0x9a3   : > { %2823 = dma.vmem_to_hbm [thread:$0]  (%p3585_p13), %s2082_s16, 256, %s2084_s19, %s2069_s15, %s3395_s20, %s3395_s20, %s3396_s24  }
 0x9a4 PF: > { %s2098_s23 = sand.u32 1, %s3363_s25   ;;  %p3933_p10 = scmp.ge.s32.totalorder %s3375_s28, 2 }
 0x9a5   : > { %s2099_s1 = scalar_lea.sflag [#allocation4], %s2098_s23 }
 0x9a6   : > { %p2858_p11 = pnand %p3933_p10, %p3590_p5 }
 0x9a8   : > { %p2859_p0 = pneg %p2858_p11 }
 0x9aa   : > { %3358 = dma.done.wait (%p2859_p0), %s2099_s1, 256  }
 0x9ab   : > { %3360 = vsyncadd (%p2859_p0), %s2099_s1, 4294967040  ;;  %p31_p2 = scmp.ge.s32.totalorder %s3565_s4, 4   ;;  %s3934_s25 = smov %s3367_s26 }
 0x9ac   : > { %s3935_s26 = smov %s3371_s27  ;;  %s3936_s27 = smov %s3577_s17 }
 0x9ad   : > { %s3937_s28 = smov %s3565_s4  ;;  %33 = sbr.rel (!%p31_p2) target bundleno = 18 (0x12), region = 153 }
 0x9b2   :  { %2105 = vsyncpa [#allocation3], 1 }
 0x9b3   :  { %2107 = vsyncpa [#allocation3 + $0x1], 1 }
 0x9b4   :  { %2108 = vsyncpa [#allocation6], 1 }
 0x9b5   :  { %2109 = vsyncpa [#allocation9], 1 }
 0x9b6   :  { %2110 = vsyncpa [#allocation12], 1 }
 0x9b7   :  { %2111 = vsyncpa [#allocation15], 1 }
 0x9b8   :  { %2112 = vsyncpa [#allocation18], 1 }
 0x9b9   :  { %2113 = vsyncpa [#allocation4], 1 }
 0x9ba   :  { %2115 = vsyncpa [#allocation4 + $0x1], 1 }

</bundles_post_ra>
